<compile_context>
chip_gen: v5e
topology: v5e:2x2
jax: 0.10.0
libtpu: 0.0.40
codegen_flags: <defaults>
</compile_context>

<pallas_src>
import math

import jax
import jax.numpy as jnp
from jax import lax
from jax.experimental import pallas as pl
from jax.experimental.pallas import tpu as pltpu

# ---------------- configuration (small, consistent with the module) ---------
B = 2                 # batch
S = 8                 # sequence length
D = 32                # model dim (stands in for 768)
NUM_HEADS = 2
DH = D // NUM_HEADS
FFN = 64
VOCAB = 64
L = 2                 # encoder layers (stand-in for 12)
OUT_DIMS = (2, 3, 4)  # classifier_a / _b / _c
TOTAL_OUT = sum(OUT_DIMS)      # 9
OUT_PAD = 128                  # lane-dense padded logits slab width
LN_EPS = 1e-12


# ---------------- Pallas kernel: encoder layers + pooler + fused heads ------
def _layer_norm(x, g, b):
    mu = jnp.mean(x, axis=-1, keepdims=True)
    var = jnp.mean((x - mu) * (x - mu), axis=-1, keepdims=True)
    return (x - mu) * lax.rsqrt(var + LN_EPS) * g + b


def mtmodel_kernel(x_ref, bias_ref,
                   wq_ref, bq_ref, wk_ref, bk_ref, wv_ref, bv_ref,
                   wo_ref, bo_ref, g1_ref, be1_ref,
                   w1_ref, b1_ref, w2_ref, b2_ref, g2_ref, be2_ref,
                   wp_ref, bp_ref, wh_ref, bh_ref,
                   o_ref):
    h = x_ref[...]                        # (S, D)  embeddings for this batch el.
    bias = bias_ref[...]                  # (1, S)  additive key mask (0 / -1e9)
    scale = 1.0 / math.sqrt(DH)
    col = lax.broadcasted_iota(jnp.int32, (1, D), 1)   # feature-column index

    for l in range(L):                    # static unrolled layer loop
        q = jnp.dot(h, wq_ref[l], preferred_element_type=jnp.float32) + bq_ref[l]
        k = jnp.dot(h, wk_ref[l], preferred_element_type=jnp.float32) + bk_ref[l]
        v = jnp.dot(h, wv_ref[l], preferred_element_type=jnp.float32) + bv_ref[l]

        # multi-head attention via block-diagonal head masks: full-width
        # matmuls, no sub-128-lane slices, no concat.
        ctx = jnp.zeros((S, D), jnp.float32)
        for hd in range(NUM_HEADS):
            sel = ((col >= hd * DH) & (col < (hd + 1) * DH)).astype(jnp.float32)
            s = jnp.einsum('qd,kd->qk', q * sel, k,
                           preferred_element_type=jnp.float32) * scale + bias
            s = s - jnp.max(s, axis=-1, keepdims=True)
            p = jnp.exp(s)
            p = p * pl.reciprocal(jnp.sum(p, axis=-1, keepdims=True), approx=True)
            ctx = ctx + jnp.dot(p, v * sel, preferred_element_type=jnp.float32)

        attn = jnp.dot(ctx, wo_ref[l], preferred_element_type=jnp.float32) + bo_ref[l]
        h = _layer_norm(h + attn, g1_ref[l], be1_ref[l])

        ff = jnp.dot(h, w1_ref[l], preferred_element_type=jnp.float32) + b1_ref[l]
        ff = jax.nn.gelu(ff)   # TODO(synk): HF BERT uses exact erf GELU; tanh-approx kept for Mosaic lowering
        ff = jnp.dot(ff, w2_ref[l], preferred_element_type=jnp.float32) + b2_ref[l]
        h = _layer_norm(h + ff, g2_ref[l], be2_ref[l])

    # BertPooler: tanh(Linear(hidden[:, 0]))  == outputs[1]
    cls = h[0:1, :]                                              # (1, D)
    pooled = jnp.tanh(jnp.dot(cls, wp_ref[...],
                              preferred_element_type=jnp.float32) + bp_ref[...])
    # dropout: eval-mode identity

    # three classifiers fused into one lane-dense padded slab (1, 128)
    o_ref[...] = (jnp.dot(pooled, wh_ref[...],
                          preferred_element_type=jnp.float32) + bh_ref[...])


def mtmodel_pallas(x_emb, attn_bias, weights):
    """x_emb: (B,S,D) f32, attn_bias: (B,1,S) f32 -> (B,1,OUT_PAD) f32."""
    in_specs = [
        pl.BlockSpec((None, S, D), lambda b: (b, 0, 0)),
        pl.BlockSpec((None, 1, S), lambda b: (b, 0, 0)),
    ]
    for w in weights:   # full-array weight blocks, constant index map
        in_specs.append(pl.BlockSpec(w.shape, lambda b, _nd=w.ndim: (0,) * _nd))

    return pl.pallas_call(
        mtmodel_kernel,
        out_shape=jax.ShapeDtypeStruct((B, 1, OUT_PAD), jnp.float32),
        grid=(B,),
        in_specs=in_specs,
        out_specs=pl.BlockSpec((None, 1, OUT_PAD), lambda b: (b, 0, 0)),
        compiler_params=pltpu.CompilerParams(
            dimension_semantics=("parallel",)),   # both TCs on v7x
    )(x_emb, attn_bias, *weights)


# ---------------- plain-JAX glue: embeddings, parameter init, full forward --
def embed(input_ids, emb):
    # word + position + token_type(0) embeddings, then LayerNorm (frozen in
    # the reference; eval semantics identical).
    x = emb["word"][input_ids] + emb["pos"][None, :, :] + emb["tok"][None, :, :]
    mu = jnp.mean(x, -1, keepdims=True)
    var = jnp.mean((x - mu) ** 2, -1, keepdims=True)
    return (x - mu) * lax.rsqrt(var + LN_EPS) * emb["gamma"] + emb["beta"]


def init_params(key):
    keys = iter(jax.random.split(key, 64))

    def nrm(shape, scale=0.05):
        return scale * jax.random.normal(next(keys), shape, jnp.float32)

    params = {}
    params["embed"] = dict(
        word=nrm((VOCAB, D)), pos=nrm((S, D)), tok=nrm((1, D)),
        gamma=jnp.ones((D,), jnp.float32), beta=jnp.zeros((D,), jnp.float32))

    # per-layer weights stacked on a leading L axis (single kernel arg each)
    bert = (
        nrm((L, D, D)), jnp.zeros((L, 1, D), jnp.float32),      # Wq, bq
        nrm((L, D, D)), jnp.zeros((L, 1, D), jnp.float32),      # Wk, bk
        nrm((L, D, D)), jnp.zeros((L, 1, D), jnp.float32),      # Wv, bv
        nrm((L, D, D)), jnp.zeros((L, 1, D), jnp.float32),      # Wo, bo
        jnp.ones((L, 1, D), jnp.float32), jnp.zeros((L, 1, D), jnp.float32),   # LN1
        nrm((L, D, FFN)), jnp.zeros((L, 1, FFN), jnp.float32),  # W1, b1
        nrm((L, FFN, D)), jnp.zeros((L, 1, D), jnp.float32),    # W2, b2
        jnp.ones((L, 1, D), jnp.float32), jnp.zeros((L, 1, D), jnp.float32),   # LN2
    )

    wp = nrm((D, D))                                  # pooler dense
    bp = jnp.zeros((1, D), jnp.float32)

    # classifier_a/b/c (PyTorch Linear layout (out, in)), fused + lane-padded
    w_heads = [nrm((o, D)) for o in OUT_DIMS]
    b_heads = [nrm((o,)) for o in OUT_DIMS]
    w_cat = jnp.concatenate(w_heads, axis=0).T                   # (D, 9)
    b_cat = jnp.concatenate(b_heads, axis=0)                     # (9,)
    wh = jnp.zeros((D, OUT_PAD), jnp.float32).at[:, :TOTAL_OUT].set(w_cat)
    bh = jnp.zeros((1, OUT_PAD), jnp.float32).at[0, :TOTAL_OUT].set(b_cat)

    params["trunk_weights"] = bert + (wp, bp, wh, bh)
    return params


def forward(input_ids, lens, mask, params):
    del lens  # unused by MTModel.forward (kept for signature fidelity)
    x = embed(input_ids, params["embed"])                            # (B,S,D)
    attn_bias = ((1.0 - mask.astype(jnp.float32)) * (-1e9)).reshape(B, 1, S)
    slab = mtmodel_pallas(x, attn_bias, params["trunk_weights"])     # (B,1,128)
    logits = slab[:, 0, :TOTAL_OUT]
    a, b, c = OUT_DIMS
    return logits[:, :a], logits[:, a:a + b], logits[:, a + b:a + b + c]


if __name__ == "__main__":
    key = jax.random.PRNGKey(0)
    k_ids, k_params = jax.random.split(key)
    input_ids = jax.random.randint(k_ids, (B, S), 0, VOCAB, dtype=jnp.int32)
    lens = jnp.array([S, 6], dtype=jnp.int32)                 # ex-1 has 2 pads
    mask = (jnp.arange(S)[None, :] < lens[:, None]).astype(jnp.float32)

    params = init_params(k_params)
    la, lb, lc = jax.jit(forward)(input_ids, lens, mask, params)
    jax.block_until_ready((la, lb, lc))

    assert la.shape == (B, 2) and lb.shape == (B, 3) and lc.shape == (B, 4)
    assert all(bool(jnp.all(jnp.isfinite(x))) for x in (la, lb, lc))
    print("KERNEL_OK")
</pallas_src>

<mosaic_0001>
module attributes {stable_mosaic.version = 11 : i64} {
  func.func @mtmodel_kernel(%arg0: i32, %arg1: memref<1x8x32xf32, #tpu.memory_space<vmem>>, %arg2: memref<1x1x8xf32, #tpu.memory_space<vmem>>, %arg3: memref<2x32x32xf32, #tpu.memory_space<vmem>>, %arg4: memref<2x1x32xf32, #tpu.memory_space<vmem>>, %arg5: memref<2x32x32xf32, #tpu.memory_space<vmem>>, %arg6: memref<2x1x32xf32, #tpu.memory_space<vmem>>, %arg7: memref<2x32x32xf32, #tpu.memory_space<vmem>>, %arg8: memref<2x1x32xf32, #tpu.memory_space<vmem>>, %arg9: memref<2x32x32xf32, #tpu.memory_space<vmem>>, %arg10: memref<2x1x32xf32, #tpu.memory_space<vmem>>, %arg11: memref<2x1x32xf32, #tpu.memory_space<vmem>>, %arg12: memref<2x1x32xf32, #tpu.memory_space<vmem>>, %arg13: memref<2x32x64xf32, #tpu.memory_space<vmem>>, %arg14: memref<2x1x64xf32, #tpu.memory_space<vmem>>, %arg15: memref<2x64x32xf32, #tpu.memory_space<vmem>>, %arg16: memref<2x1x32xf32, #tpu.memory_space<vmem>>, %arg17: memref<2x1x32xf32, #tpu.memory_space<vmem>>, %arg18: memref<2x1x32xf32, #tpu.memory_space<vmem>>, %arg19: memref<32x32xf32, #tpu.memory_space<vmem>>, %arg20: memref<1x32xf32, #tpu.memory_space<vmem>>, %arg21: memref<32x128xf32, #tpu.memory_space<vmem>>, %arg22: memref<1x128xf32, #tpu.memory_space<vmem>>, %arg23: memref<1x1x128xf32, #tpu.memory_space<vmem>>) attributes {dimension_semantics = [#tpu.dimension_semantics<parallel>], iteration_bounds = array<i64: 2>, scalar_prefetch = 0 : i64, scratch_operands = 0 : i64, tpu.core_type = #tpu.core_type<tc>, window_params = [{transform_indices = @transform_0, window_bounds = array<i64: 1, 8, 32>}, {transform_indices = @transform_1, window_bounds = array<i64: 1, 1, 8>}, {pipeline_mode = #tpu.pipeline_mode<synchronous>, transform_indices = @transform_2, window_bounds = array<i64: 2, 32, 32>}, {pipeline_mode = #tpu.pipeline_mode<synchronous>, transform_indices = @transform_3, window_bounds = array<i64: 2, 1, 32>}, {pipeline_mode = #tpu.pipeline_mode<synchronous>, transform_indices = @transform_4, window_bounds = array<i64: 2, 32, 32>}, {pipeline_mode = #tpu.pipeline_mode<synchronous>, transform_indices = @transform_5, window_bounds = array<i64: 2, 1, 32>}, {pipeline_mode = #tpu.pipeline_mode<synchronous>, transform_indices = @transform_6, window_bounds = array<i64: 2, 32, 32>}, {pipeline_mode = #tpu.pipeline_mode<synchronous>, transform_indices = @transform_7, window_bounds = array<i64: 2, 1, 32>}, {pipeline_mode = #tpu.pipeline_mode<synchronous>, transform_indices = @transform_8, window_bounds = array<i64: 2, 32, 32>}, {pipeline_mode = #tpu.pipeline_mode<synchronous>, transform_indices = @transform_9, window_bounds = array<i64: 2, 1, 32>}, {pipeline_mode = #tpu.pipeline_mode<synchronous>, transform_indices = @transform_10, window_bounds = array<i64: 2, 1, 32>}, {pipeline_mode = #tpu.pipeline_mode<synchronous>, transform_indices = @transform_11, window_bounds = array<i64: 2, 1, 32>}, {pipeline_mode = #tpu.pipeline_mode<synchronous>, transform_indices = @transform_12, window_bounds = array<i64: 2, 32, 64>}, {pipeline_mode = #tpu.pipeline_mode<synchronous>, transform_indices = @transform_13, window_bounds = array<i64: 2, 1, 64>}, {pipeline_mode = #tpu.pipeline_mode<synchronous>, transform_indices = @transform_14, window_bounds = array<i64: 2, 64, 32>}, {pipeline_mode = #tpu.pipeline_mode<synchronous>, transform_indices = @transform_15, window_bounds = array<i64: 2, 1, 32>}, {pipeline_mode = #tpu.pipeline_mode<synchronous>, transform_indices = @transform_16, window_bounds = array<i64: 2, 1, 32>}, {pipeline_mode = #tpu.pipeline_mode<synchronous>, transform_indices = @transform_17, window_bounds = array<i64: 2, 1, 32>}, {pipeline_mode = #tpu.pipeline_mode<synchronous>, transform_indices = @transform_18, window_bounds = array<i64: 32, 32>}, {pipeline_mode = #tpu.pipeline_mode<synchronous>, transform_indices = @transform_19, window_bounds = array<i64: 1, 32>}, {pipeline_mode = #tpu.pipeline_mode<synchronous>, transform_indices = @transform_20, window_bounds = array<i64: 32, 128>}, {pipeline_mode = #tpu.pipeline_mode<synchronous>, transform_indices = @transform_21, window_bounds = array<i64: 1, 128>}, {transform_indices = @transform_22, window_bounds = array<i64: 1, 1, 128>}]} {
    %c0 = arith.constant 0 : index
    %c0_0 = arith.constant 0 : index
    %c0_1 = arith.constant 0 : index
    %0 = vector.load %arg1[%c0, %c0_0, %c0_1] : memref<1x8x32xf32, #tpu.memory_space<vmem>>, vector<1x8x32xf32>
    %1 = vector.shape_cast %0 : vector<1x8x32xf32> to vector<8x32xf32>
    %c0_2 = arith.constant 0 : index
    %c0_3 = arith.constant 0 : index
    %c0_4 = arith.constant 0 : index
    %2 = vector.load %arg2[%c0_2, %c0_3, %c0_4] : memref<1x1x8xf32, #tpu.memory_space<vmem>>, vector<1x1x8xf32>
    %3 = vector.shape_cast %2 : vector<1x1x8xf32> to vector<1x8xf32>
    %4 = tpu.iota {dimensions = array<i32: 1>} : vector<1x32xi32>
    %c0_5 = arith.constant 0 : index
    %c0_6 = arith.constant 0 : index
    %c0_7 = arith.constant 0 : index
    %5 = vector.load %arg3[%c0_5, %c0_6, %c0_7] : memref<2x32x32xf32, #tpu.memory_space<vmem>>, vector<1x32x32xf32>
    %6 = vector.shape_cast %5 : vector<1x32x32xf32> to vector<32x32xf32>
    %cst = arith.constant dense<0.000000e+00> : vector<8x32xf32>
    %7 = tpu.matmul %1, %6, %cst {dimension_numbers = #tpu.dot_dimension_numbers<[1], [0], [0], [1], [0, 0, 1, 1], [], []>} : vector<8x32xf32>, vector<32x32xf32>, vector<8x32xf32> -> vector<8x32xf32>
    %c0_8 = arith.constant 0 : index
    %c0_9 = arith.constant 0 : index
    %c0_10 = arith.constant 0 : index
    %8 = vector.load %arg4[%c0_8, %c0_9, %c0_10] : memref<2x1x32xf32, #tpu.memory_space<vmem>>, vector<1x1x32xf32>
    %9 = vector.shape_cast %8 : vector<1x1x32xf32> to vector<1x32xf32>
    %10 = vector.broadcast %9 : vector<1x32xf32> to vector<8x32xf32>
    %11 = arith.addf %7, %10 : vector<8x32xf32>
    %c0_11 = arith.constant 0 : index
    %c0_12 = arith.constant 0 : index
    %c0_13 = arith.constant 0 : index
    %12 = vector.load %arg5[%c0_11, %c0_12, %c0_13] : memref<2x32x32xf32, #tpu.memory_space<vmem>>, vector<1x32x32xf32>
    %13 = vector.shape_cast %12 : vector<1x32x32xf32> to vector<32x32xf32>
    %cst_14 = arith.constant dense<0.000000e+00> : vector<8x32xf32>
    %14 = tpu.matmul %1, %13, %cst_14 {dimension_numbers = #tpu.dot_dimension_numbers<[1], [0], [0], [1], [0, 0, 1, 1], [], []>} : vector<8x32xf32>, vector<32x32xf32>, vector<8x32xf32> -> vector<8x32xf32>
    %c0_15 = arith.constant 0 : index
    %c0_16 = arith.constant 0 : index
    %c0_17 = arith.constant 0 : index
    %15 = vector.load %arg6[%c0_15, %c0_16, %c0_17] : memref<2x1x32xf32, #tpu.memory_space<vmem>>, vector<1x1x32xf32>
    %16 = vector.shape_cast %15 : vector<1x1x32xf32> to vector<1x32xf32>
    %17 = vector.broadcast %16 : vector<1x32xf32> to vector<8x32xf32>
    %18 = arith.addf %14, %17 : vector<8x32xf32>
    %c0_18 = arith.constant 0 : index
    %c0_19 = arith.constant 0 : index
    %c0_20 = arith.constant 0 : index
    %19 = vector.load %arg7[%c0_18, %c0_19, %c0_20] : memref<2x32x32xf32, #tpu.memory_space<vmem>>, vector<1x32x32xf32>
    %20 = vector.shape_cast %19 : vector<1x32x32xf32> to vector<32x32xf32>
    %cst_21 = arith.constant dense<0.000000e+00> : vector<8x32xf32>
    %21 = tpu.matmul %1, %20, %cst_21 {dimension_numbers = #tpu.dot_dimension_numbers<[1], [0], [0], [1], [0, 0, 1, 1], [], []>} : vector<8x32xf32>, vector<32x32xf32>, vector<8x32xf32> -> vector<8x32xf32>
    %c0_22 = arith.constant 0 : index
    %c0_23 = arith.constant 0 : index
    %c0_24 = arith.constant 0 : index
    %22 = vector.load %arg8[%c0_22, %c0_23, %c0_24] : memref<2x1x32xf32, #tpu.memory_space<vmem>>, vector<1x1x32xf32>
    %23 = vector.shape_cast %22 : vector<1x1x32xf32> to vector<1x32xf32>
    %24 = vector.broadcast %23 : vector<1x32xf32> to vector<8x32xf32>
    %25 = arith.addf %21, %24 : vector<8x32xf32>
    %cst_25 = arith.constant 0.000000e+00 : f32
    %26 = vector.broadcast %cst_25 : f32 to vector<8x32xf32>
    %c0_i32 = arith.constant 0 : i32
    %27 = vector.broadcast %c0_i32 : i32 to vector<1x32xi32>
    %28 = arith.cmpi sge, %4, %27 : vector<1x32xi32>
    %c16_i32 = arith.constant 16 : i32
    %29 = vector.broadcast %c16_i32 : i32 to vector<1x32xi32>
    %30 = arith.cmpi slt, %4, %29 : vector<1x32xi32>
    %31 = arith.andi %28, %30 : vector<1x32xi1>
    %32 = arith.extui %31 : vector<1x32xi1> to vector<1x32xi32>
    %33 = arith.sitofp %32 : vector<1x32xi32> to vector<1x32xf32>
    %34 = vector.broadcast %33 : vector<1x32xf32> to vector<8x32xf32>
    %35 = arith.mulf %11, %34 : vector<8x32xf32>
    "tpu.trace_start"() <{level = 10 : i32, message = "qd,kd->qk"}> : () -> ()
    %cst_26 = arith.constant dense<0.000000e+00> : vector<8x8xf32>
    %36 = tpu.matmul %35, %18, %cst_26 {dimension_numbers = #tpu.dot_dimension_numbers<[1], [1], [0], [0], [0, 0, 1, 0], [], []>} : vector<8x32xf32>, vector<8x32xf32>, vector<8x8xf32> -> vector<8x8xf32>
    "tpu.trace_stop"() : () -> ()
    %cst_27 = arith.constant 2.500000e-01 : f32
    %37 = vector.broadcast %cst_27 : f32 to vector<8x8xf32>
    %38 = arith.mulf %36, %37 : vector<8x8xf32>
    %39 = vector.broadcast %3 : vector<1x8xf32> to vector<8x8xf32>
    %40 = arith.addf %38, %39 : vector<8x8xf32>
    %cst_28 = arith.constant dense<0xFF800000> : vector<8xf32>
    %41 = vector.multi_reduction <maximumf>, %40, %cst_28 [1] : vector<8x8xf32> to vector<8xf32>
    %42 = vector.shape_cast %41 : vector<8xf32> to vector<8x1xf32>
    %43 = vector.broadcast %42 : vector<8x1xf32> to vector<8x8xf32>
    %44 = arith.subf %40, %43 : vector<8x8xf32>
    %45 = math.exp %44 : vector<8x8xf32>
    %cst_29 = arith.constant dense<0.000000e+00> : vector<8xf32>
    %46 = vector.multi_reduction <add>, %45, %cst_29 [1] : vector<8x8xf32> to vector<8xf32>
    %47 = vector.shape_cast %46 : vector<8xf32> to vector<8x1xf32>
    %48 = tpu.reciprocal %47 {approx = true} : vector<8x1xf32> -> vector<8x1xf32>
    %49 = vector.broadcast %48 : vector<8x1xf32> to vector<8x8xf32>
    %50 = arith.mulf %45, %49 : vector<8x8xf32>
    %51 = vector.broadcast %33 : vector<1x32xf32> to vector<8x32xf32>
    %52 = arith.mulf %25, %51 : vector<8x32xf32>
    %cst_30 = arith.constant dense<0.000000e+00> : vector<8x32xf32>
    %53 = tpu.matmul %50, %52, %cst_30 {dimension_numbers = #tpu.dot_dimension_numbers<[1], [0], [0], [1], [0, 0, 1, 1], [], []>} : vector<8x8xf32>, vector<8x32xf32>, vector<8x32xf32> -> vector<8x32xf32>
    %54 = arith.addf %26, %53 : vector<8x32xf32>
    %c16_i32_31 = arith.constant 16 : i32
    %55 = vector.broadcast %c16_i32_31 : i32 to vector<1x32xi32>
    %56 = arith.cmpi sge, %4, %55 : vector<1x32xi32>
    %c32_i32 = arith.constant 32 : i32
    %57 = vector.broadcast %c32_i32 : i32 to vector<1x32xi32>
    %58 = arith.cmpi slt, %4, %57 : vector<1x32xi32>
    %59 = arith.andi %56, %58 : vector<1x32xi1>
    %60 = arith.extui %59 : vector<1x32xi1> to vector<1x32xi32>
    %61 = arith.sitofp %60 : vector<1x32xi32> to vector<1x32xf32>
    %62 = vector.broadcast %61 : vector<1x32xf32> to vector<8x32xf32>
    %63 = arith.mulf %11, %62 : vector<8x32xf32>
    "tpu.trace_start"() <{level = 10 : i32, message = "qd,kd->qk"}> : () -> ()
    %cst_32 = arith.constant dense<0.000000e+00> : vector<8x8xf32>
    %64 = tpu.matmul %63, %18, %cst_32 {dimension_numbers = #tpu.dot_dimension_numbers<[1], [1], [0], [0], [0, 0, 1, 0], [], []>} : vector<8x32xf32>, vector<8x32xf32>, vector<8x8xf32> -> vector<8x8xf32>
    "tpu.trace_stop"() : () -> ()
    %cst_33 = arith.constant 2.500000e-01 : f32
    %65 = vector.broadcast %cst_33 : f32 to vector<8x8xf32>
    %66 = arith.mulf %64, %65 : vector<8x8xf32>
    %67 = vector.broadcast %3 : vector<1x8xf32> to vector<8x8xf32>
    %68 = arith.addf %66, %67 : vector<8x8xf32>
    %cst_34 = arith.constant dense<0xFF800000> : vector<8xf32>
    %69 = vector.multi_reduction <maximumf>, %68, %cst_34 [1] : vector<8x8xf32> to vector<8xf32>
    %70 = vector.shape_cast %69 : vector<8xf32> to vector<8x1xf32>
    %71 = vector.broadcast %70 : vector<8x1xf32> to vector<8x8xf32>
    %72 = arith.subf %68, %71 : vector<8x8xf32>
    %73 = math.exp %72 : vector<8x8xf32>
    %cst_35 = arith.constant dense<0.000000e+00> : vector<8xf32>
    %74 = vector.multi_reduction <add>, %73, %cst_35 [1] : vector<8x8xf32> to vector<8xf32>
    %75 = vector.shape_cast %74 : vector<8xf32> to vector<8x1xf32>
    %76 = tpu.reciprocal %75 {approx = true} : vector<8x1xf32> -> vector<8x1xf32>
    %77 = vector.broadcast %76 : vector<8x1xf32> to vector<8x8xf32>
    %78 = arith.mulf %73, %77 : vector<8x8xf32>
    %79 = vector.broadcast %61 : vector<1x32xf32> to vector<8x32xf32>
    %80 = arith.mulf %25, %79 : vector<8x32xf32>
    %cst_36 = arith.constant dense<0.000000e+00> : vector<8x32xf32>
    %81 = tpu.matmul %78, %80, %cst_36 {dimension_numbers = #tpu.dot_dimension_numbers<[1], [0], [0], [1], [0, 0, 1, 1], [], []>} : vector<8x8xf32>, vector<8x32xf32>, vector<8x32xf32> -> vector<8x32xf32>
    %82 = arith.addf %54, %81 : vector<8x32xf32>
    %c0_37 = arith.constant 0 : index
    %c0_38 = arith.constant 0 : index
    %c0_39 = arith.constant 0 : index
    %83 = vector.load %arg9[%c0_37, %c0_38, %c0_39] : memref<2x32x32xf32, #tpu.memory_space<vmem>>, vector<1x32x32xf32>
    %84 = vector.shape_cast %83 : vector<1x32x32xf32> to vector<32x32xf32>
    %cst_40 = arith.constant dense<0.000000e+00> : vector<8x32xf32>
    %85 = tpu.matmul %82, %84, %cst_40 {dimension_numbers = #tpu.dot_dimension_numbers<[1], [0], [0], [1], [0, 0, 1, 1], [], []>} : vector<8x32xf32>, vector<32x32xf32>, vector<8x32xf32> -> vector<8x32xf32>
    %c0_41 = arith.constant 0 : index
    %c0_42 = arith.constant 0 : index
    %c0_43 = arith.constant 0 : index
    %86 = vector.load %arg10[%c0_41, %c0_42, %c0_43] : memref<2x1x32xf32, #tpu.memory_space<vmem>>, vector<1x1x32xf32>
    %87 = vector.shape_cast %86 : vector<1x1x32xf32> to vector<1x32xf32>
    %88 = vector.broadcast %87 : vector<1x32xf32> to vector<8x32xf32>
    %89 = arith.addf %85, %88 : vector<8x32xf32>
    %90 = arith.addf %1, %89 : vector<8x32xf32>
    %c0_44 = arith.constant 0 : index
    %c0_45 = arith.constant 0 : index
    %c0_46 = arith.constant 0 : index
    %91 = vector.load %arg11[%c0_44, %c0_45, %c0_46] : memref<2x1x32xf32, #tpu.memory_space<vmem>>, vector<1x1x32xf32>
    %92 = vector.shape_cast %91 : vector<1x1x32xf32> to vector<1x32xf32>
    %c0_47 = arith.constant 0 : index
    %c0_48 = arith.constant 0 : index
    %c0_49 = arith.constant 0 : index
    %93 = vector.load %arg12[%c0_47, %c0_48, %c0_49] : memref<2x1x32xf32, #tpu.memory_space<vmem>>, vector<1x1x32xf32>
    %94 = vector.shape_cast %93 : vector<1x1x32xf32> to vector<1x32xf32>
    %cst_50 = arith.constant dense<0.000000e+00> : vector<8xf32>
    %95 = vector.multi_reduction <add>, %90, %cst_50 [1] : vector<8x32xf32> to vector<8xf32>
    %96 = vector.shape_cast %95 : vector<8xf32> to vector<8x1xf32>
    %cst_51 = arith.constant 3.200000e+01 : f32
    %97 = vector.broadcast %cst_51 : f32 to vector<8x1xf32>
    %98 = arith.divf %96, %97 : vector<8x1xf32>
    %99 = vector.broadcast %98 : vector<8x1xf32> to vector<8x32xf32>
    %100 = arith.subf %90, %99 : vector<8x32xf32>
    %101 = vector.broadcast %98 : vector<8x1xf32> to vector<8x32xf32>
    %102 = arith.subf %90, %101 : vector<8x32xf32>
    %103 = arith.mulf %100, %102 : vector<8x32xf32>
    %cst_52 = arith.constant dense<0.000000e+00> : vector<8xf32>
    %104 = vector.multi_reduction <add>, %103, %cst_52 [1] : vector<8x32xf32> to vector<8xf32>
    %105 = vector.shape_cast %104 : vector<8xf32> to vector<8x1xf32>
    %cst_53 = arith.constant 3.200000e+01 : f32
    %106 = vector.broadcast %cst_53 : f32 to vector<8x1xf32>
    %107 = arith.divf %105, %106 : vector<8x1xf32>
    %108 = vector.broadcast %98 : vector<8x1xf32> to vector<8x32xf32>
    %109 = arith.subf %90, %108 : vector<8x32xf32>
    %cst_54 = arith.constant 9.99999996E-13 : f32
    %110 = vector.broadcast %cst_54 : f32 to vector<8x1xf32>
    %111 = arith.addf %107, %110 : vector<8x1xf32>
    %112 = math.rsqrt %111 : vector<8x1xf32>
    %113 = vector.broadcast %112 : vector<8x1xf32> to vector<8x32xf32>
    %114 = arith.mulf %109, %113 : vector<8x32xf32>
    %115 = vector.broadcast %92 : vector<1x32xf32> to vector<8x32xf32>
    %116 = arith.mulf %114, %115 : vector<8x32xf32>
    %117 = vector.broadcast %94 : vector<1x32xf32> to vector<8x32xf32>
    %118 = arith.addf %116, %117 : vector<8x32xf32>
    %c0_55 = arith.constant 0 : index
    %c0_56 = arith.constant 0 : index
    %c0_57 = arith.constant 0 : index
    %119 = vector.load %arg13[%c0_55, %c0_56, %c0_57] : memref<2x32x64xf32, #tpu.memory_space<vmem>>, vector<1x32x64xf32>
    %120 = vector.shape_cast %119 : vector<1x32x64xf32> to vector<32x64xf32>
    %cst_58 = arith.constant dense<0.000000e+00> : vector<8x64xf32>
    %121 = tpu.matmul %118, %120, %cst_58 {dimension_numbers = #tpu.dot_dimension_numbers<[1], [0], [0], [1], [0, 0, 1, 1], [], []>} : vector<8x32xf32>, vector<32x64xf32>, vector<8x64xf32> -> vector<8x64xf32>
    %c0_59 = arith.constant 0 : index
    %c0_60 = arith.constant 0 : index
    %c0_61 = arith.constant 0 : index
    %122 = vector.load %arg14[%c0_59, %c0_60, %c0_61] : memref<2x1x64xf32, #tpu.memory_space<vmem>>, vector<1x1x64xf32>
    %123 = vector.shape_cast %122 : vector<1x1x64xf32> to vector<1x64xf32>
    %124 = vector.broadcast %123 : vector<1x64xf32> to vector<8x64xf32>
    %125 = arith.addf %121, %124 : vector<8x64xf32>
    %126 = arith.mulf %125, %125 : vector<8x64xf32>
    %127 = arith.mulf %125, %126 : vector<8x64xf32>
    %cst_62 = arith.constant 4.471500e-02 : f32
    %128 = vector.broadcast %cst_62 : f32 to vector<8x64xf32>
    %129 = arith.mulf %128, %127 : vector<8x64xf32>
    %130 = arith.addf %125, %129 : vector<8x64xf32>
    %cst_63 = arith.constant 0.797884583 : f32
    %131 = vector.broadcast %cst_63 : f32 to vector<8x64xf32>
    %132 = arith.mulf %131, %130 : vector<8x64xf32>
    %133 = math.tanh %132 : vector<8x64xf32>
    %cst_64 = arith.constant 1.000000e+00 : f32
    %134 = vector.broadcast %cst_64 : f32 to vector<8x64xf32>
    %135 = arith.addf %134, %133 : vector<8x64xf32>
    %cst_65 = arith.constant 5.000000e-01 : f32
    %136 = vector.broadcast %cst_65 : f32 to vector<8x64xf32>
    %137 = arith.mulf %136, %135 : vector<8x64xf32>
    %138 = arith.mulf %125, %137 : vector<8x64xf32>
    %c0_66 = arith.constant 0 : index
    %c0_67 = arith.constant 0 : index
    %c0_68 = arith.constant 0 : index
    %139 = vector.load %arg15[%c0_66, %c0_67, %c0_68] : memref<2x64x32xf32, #tpu.memory_space<vmem>>, vector<1x64x32xf32>
    %140 = vector.shape_cast %139 : vector<1x64x32xf32> to vector<64x32xf32>
    %cst_69 = arith.constant dense<0.000000e+00> : vector<8x32xf32>
    %141 = tpu.matmul %138, %140, %cst_69 {dimension_numbers = #tpu.dot_dimension_numbers<[1], [0], [0], [1], [0, 0, 1, 1], [], []>} : vector<8x64xf32>, vector<64x32xf32>, vector<8x32xf32> -> vector<8x32xf32>
    %c0_70 = arith.constant 0 : index
    %c0_71 = arith.constant 0 : index
    %c0_72 = arith.constant 0 : index
    %142 = vector.load %arg16[%c0_70, %c0_71, %c0_72] : memref<2x1x32xf32, #tpu.memory_space<vmem>>, vector<1x1x32xf32>
    %143 = vector.shape_cast %142 : vector<1x1x32xf32> to vector<1x32xf32>
    %144 = vector.broadcast %143 : vector<1x32xf32> to vector<8x32xf32>
    %145 = arith.addf %141, %144 : vector<8x32xf32>
    %146 = arith.addf %118, %145 : vector<8x32xf32>
    %c0_73 = arith.constant 0 : index
    %c0_74 = arith.constant 0 : index
    %c0_75 = arith.constant 0 : index
    %147 = vector.load %arg17[%c0_73, %c0_74, %c0_75] : memref<2x1x32xf32, #tpu.memory_space<vmem>>, vector<1x1x32xf32>
    %148 = vector.shape_cast %147 : vector<1x1x32xf32> to vector<1x32xf32>
    %c0_76 = arith.constant 0 : index
    %c0_77 = arith.constant 0 : index
    %c0_78 = arith.constant 0 : index
    %149 = vector.load %arg18[%c0_76, %c0_77, %c0_78] : memref<2x1x32xf32, #tpu.memory_space<vmem>>, vector<1x1x32xf32>
    %150 = vector.shape_cast %149 : vector<1x1x32xf32> to vector<1x32xf32>
    %cst_79 = arith.constant dense<0.000000e+00> : vector<8xf32>
    %151 = vector.multi_reduction <add>, %146, %cst_79 [1] : vector<8x32xf32> to vector<8xf32>
    %152 = vector.shape_cast %151 : vector<8xf32> to vector<8x1xf32>
    %cst_80 = arith.constant 3.200000e+01 : f32
    %153 = vector.broadcast %cst_80 : f32 to vector<8x1xf32>
    %154 = arith.divf %152, %153 : vector<8x1xf32>
    %155 = vector.broadcast %154 : vector<8x1xf32> to vector<8x32xf32>
    %156 = arith.subf %146, %155 : vector<8x32xf32>
    %157 = vector.broadcast %154 : vector<8x1xf32> to vector<8x32xf32>
    %158 = arith.subf %146, %157 : vector<8x32xf32>
    %159 = arith.mulf %156, %158 : vector<8x32xf32>
    %cst_81 = arith.constant dense<0.000000e+00> : vector<8xf32>
    %160 = vector.multi_reduction <add>, %159, %cst_81 [1] : vector<8x32xf32> to vector<8xf32>
    %161 = vector.shape_cast %160 : vector<8xf32> to vector<8x1xf32>
    %cst_82 = arith.constant 3.200000e+01 : f32
    %162 = vector.broadcast %cst_82 : f32 to vector<8x1xf32>
    %163 = arith.divf %161, %162 : vector<8x1xf32>
    %164 = vector.broadcast %154 : vector<8x1xf32> to vector<8x32xf32>
    %165 = arith.subf %146, %164 : vector<8x32xf32>
    %cst_83 = arith.constant 9.99999996E-13 : f32
    %166 = vector.broadcast %cst_83 : f32 to vector<8x1xf32>
    %167 = arith.addf %163, %166 : vector<8x1xf32>
    %168 = math.rsqrt %167 : vector<8x1xf32>
    %169 = vector.broadcast %168 : vector<8x1xf32> to vector<8x32xf32>
    %170 = arith.mulf %165, %169 : vector<8x32xf32>
    %171 = vector.broadcast %148 : vector<1x32xf32> to vector<8x32xf32>
    %172 = arith.mulf %170, %171 : vector<8x32xf32>
    %173 = vector.broadcast %150 : vector<1x32xf32> to vector<8x32xf32>
    %174 = arith.addf %172, %173 : vector<8x32xf32>
    %c1 = arith.constant 1 : index
    %c0_84 = arith.constant 0 : index
    %c0_85 = arith.constant 0 : index
    %175 = vector.load %arg3[%c1, %c0_84, %c0_85] : memref<2x32x32xf32, #tpu.memory_space<vmem>>, vector<1x32x32xf32>
    %176 = vector.shape_cast %175 : vector<1x32x32xf32> to vector<32x32xf32>
    %cst_86 = arith.constant dense<0.000000e+00> : vector<8x32xf32>
    %177 = tpu.matmul %174, %176, %cst_86 {dimension_numbers = #tpu.dot_dimension_numbers<[1], [0], [0], [1], [0, 0, 1, 1], [], []>} : vector<8x32xf32>, vector<32x32xf32>, vector<8x32xf32> -> vector<8x32xf32>
    %c1_87 = arith.constant 1 : index
    %c0_88 = arith.constant 0 : index
    %c0_89 = arith.constant 0 : index
    %178 = vector.load %arg4[%c1_87, %c0_88, %c0_89] : memref<2x1x32xf32, #tpu.memory_space<vmem>>, vector<1x1x32xf32>
    %179 = vector.shape_cast %178 : vector<1x1x32xf32> to vector<1x32xf32>
    %180 = vector.broadcast %179 : vector<1x32xf32> to vector<8x32xf32>
    %181 = arith.addf %177, %180 : vector<8x32xf32>
    %c1_90 = arith.constant 1 : index
    %c0_91 = arith.constant 0 : index
    %c0_92 = arith.constant 0 : index
    %182 = vector.load %arg5[%c1_90, %c0_91, %c0_92] : memref<2x32x32xf32, #tpu.memory_space<vmem>>, vector<1x32x32xf32>
    %183 = vector.shape_cast %182 : vector<1x32x32xf32> to vector<32x32xf32>
    %cst_93 = arith.constant dense<0.000000e+00> : vector<8x32xf32>
    %184 = tpu.matmul %174, %183, %cst_93 {dimension_numbers = #tpu.dot_dimension_numbers<[1], [0], [0], [1], [0, 0, 1, 1], [], []>} : vector<8x32xf32>, vector<32x32xf32>, vector<8x32xf32> -> vector<8x32xf32>
    %c1_94 = arith.constant 1 : index
    %c0_95 = arith.constant 0 : index
    %c0_96 = arith.constant 0 : index
    %185 = vector.load %arg6[%c1_94, %c0_95, %c0_96] : memref<2x1x32xf32, #tpu.memory_space<vmem>>, vector<1x1x32xf32>
    %186 = vector.shape_cast %185 : vector<1x1x32xf32> to vector<1x32xf32>
    %187 = vector.broadcast %186 : vector<1x32xf32> to vector<8x32xf32>
    %188 = arith.addf %184, %187 : vector<8x32xf32>
    %c1_97 = arith.constant 1 : index
    %c0_98 = arith.constant 0 : index
    %c0_99 = arith.constant 0 : index
    %189 = vector.load %arg7[%c1_97, %c0_98, %c0_99] : memref<2x32x32xf32, #tpu.memory_space<vmem>>, vector<1x32x32xf32>
    %190 = vector.shape_cast %189 : vector<1x32x32xf32> to vector<32x32xf32>
    %cst_100 = arith.constant dense<0.000000e+00> : vector<8x32xf32>
    %191 = tpu.matmul %174, %190, %cst_100 {dimension_numbers = #tpu.dot_dimension_numbers<[1], [0], [0], [1], [0, 0, 1, 1], [], []>} : vector<8x32xf32>, vector<32x32xf32>, vector<8x32xf32> -> vector<8x32xf32>
    %c1_101 = arith.constant 1 : index
    %c0_102 = arith.constant 0 : index
    %c0_103 = arith.constant 0 : index
    %192 = vector.load %arg8[%c1_101, %c0_102, %c0_103] : memref<2x1x32xf32, #tpu.memory_space<vmem>>, vector<1x1x32xf32>
    %193 = vector.shape_cast %192 : vector<1x1x32xf32> to vector<1x32xf32>
    %194 = vector.broadcast %193 : vector<1x32xf32> to vector<8x32xf32>
    %195 = arith.addf %191, %194 : vector<8x32xf32>
    %cst_104 = arith.constant 0.000000e+00 : f32
    %196 = vector.broadcast %cst_104 : f32 to vector<8x32xf32>
    %c0_i32_105 = arith.constant 0 : i32
    %197 = vector.broadcast %c0_i32_105 : i32 to vector<1x32xi32>
    %198 = arith.cmpi sge, %4, %197 : vector<1x32xi32>
    %c16_i32_106 = arith.constant 16 : i32
    %199 = vector.broadcast %c16_i32_106 : i32 to vector<1x32xi32>
    %200 = arith.cmpi slt, %4, %199 : vector<1x32xi32>
    %201 = arith.andi %198, %200 : vector<1x32xi1>
    %202 = arith.extui %201 : vector<1x32xi1> to vector<1x32xi32>
    %203 = arith.sitofp %202 : vector<1x32xi32> to vector<1x32xf32>
    %204 = vector.broadcast %203 : vector<1x32xf32> to vector<8x32xf32>
    %205 = arith.mulf %181, %204 : vector<8x32xf32>
    "tpu.trace_start"() <{level = 10 : i32, message = "qd,kd->qk"}> : () -> ()
    %cst_107 = arith.constant dense<0.000000e+00> : vector<8x8xf32>
    %206 = tpu.matmul %205, %188, %cst_107 {dimension_numbers = #tpu.dot_dimension_numbers<[1], [1], [0], [0], [0, 0, 1, 0], [], []>} : vector<8x32xf32>, vector<8x32xf32>, vector<8x8xf32> -> vector<8x8xf32>
    "tpu.trace_stop"() : () -> ()
    %cst_108 = arith.constant 2.500000e-01 : f32
    %207 = vector.broadcast %cst_108 : f32 to vector<8x8xf32>
    %208 = arith.mulf %206, %207 : vector<8x8xf32>
    %209 = vector.broadcast %3 : vector<1x8xf32> to vector<8x8xf32>
    %210 = arith.addf %208, %209 : vector<8x8xf32>
    %cst_109 = arith.constant dense<0xFF800000> : vector<8xf32>
    %211 = vector.multi_reduction <maximumf>, %210, %cst_109 [1] : vector<8x8xf32> to vector<8xf32>
    %212 = vector.shape_cast %211 : vector<8xf32> to vector<8x1xf32>
    %213 = vector.broadcast %212 : vector<8x1xf32> to vector<8x8xf32>
    %214 = arith.subf %210, %213 : vector<8x8xf32>
    %215 = math.exp %214 : vector<8x8xf32>
    %cst_110 = arith.constant dense<0.000000e+00> : vector<8xf32>
    %216 = vector.multi_reduction <add>, %215, %cst_110 [1] : vector<8x8xf32> to vector<8xf32>
    %217 = vector.shape_cast %216 : vector<8xf32> to vector<8x1xf32>
    %218 = tpu.reciprocal %217 {approx = true} : vector<8x1xf32> -> vector<8x1xf32>
    %219 = vector.broadcast %218 : vector<8x1xf32> to vector<8x8xf32>
    %220 = arith.mulf %215, %219 : vector<8x8xf32>
    %221 = vector.broadcast %203 : vector<1x32xf32> to vector<8x32xf32>
    %222 = arith.mulf %195, %221 : vector<8x32xf32>
    %cst_111 = arith.constant dense<0.000000e+00> : vector<8x32xf32>
    %223 = tpu.matmul %220, %222, %cst_111 {dimension_numbers = #tpu.dot_dimension_numbers<[1], [0], [0], [1], [0, 0, 1, 1], [], []>} : vector<8x8xf32>, vector<8x32xf32>, vector<8x32xf32> -> vector<8x32xf32>
    %224 = arith.addf %196, %223 : vector<8x32xf32>
    %c16_i32_112 = arith.constant 16 : i32
    %225 = vector.broadcast %c16_i32_112 : i32 to vector<1x32xi32>
    %226 = arith.cmpi sge, %4, %225 : vector<1x32xi32>
    %c32_i32_113 = arith.constant 32 : i32
    %227 = vector.broadcast %c32_i32_113 : i32 to vector<1x32xi32>
    %228 = arith.cmpi slt, %4, %227 : vector<1x32xi32>
    %229 = arith.andi %226, %228 : vector<1x32xi1>
    %230 = arith.extui %229 : vector<1x32xi1> to vector<1x32xi32>
    %231 = arith.sitofp %230 : vector<1x32xi32> to vector<1x32xf32>
    %232 = vector.broadcast %231 : vector<1x32xf32> to vector<8x32xf32>
    %233 = arith.mulf %181, %232 : vector<8x32xf32>
    "tpu.trace_start"() <{level = 10 : i32, message = "qd,kd->qk"}> : () -> ()
    %cst_114 = arith.constant dense<0.000000e+00> : vector<8x8xf32>
    %234 = tpu.matmul %233, %188, %cst_114 {dimension_numbers = #tpu.dot_dimension_numbers<[1], [1], [0], [0], [0, 0, 1, 0], [], []>} : vector<8x32xf32>, vector<8x32xf32>, vector<8x8xf32> -> vector<8x8xf32>
    "tpu.trace_stop"() : () -> ()
    %cst_115 = arith.constant 2.500000e-01 : f32
    %235 = vector.broadcast %cst_115 : f32 to vector<8x8xf32>
    %236 = arith.mulf %234, %235 : vector<8x8xf32>
    %237 = vector.broadcast %3 : vector<1x8xf32> to vector<8x8xf32>
    %238 = arith.addf %236, %237 : vector<8x8xf32>
    %cst_116 = arith.constant dense<0xFF800000> : vector<8xf32>
    %239 = vector.multi_reduction <maximumf>, %238, %cst_116 [1] : vector<8x8xf32> to vector<8xf32>
    %240 = vector.shape_cast %239 : vector<8xf32> to vector<8x1xf32>
    %241 = vector.broadcast %240 : vector<8x1xf32> to vector<8x8xf32>
    %242 = arith.subf %238, %241 : vector<8x8xf32>
    %243 = math.exp %242 : vector<8x8xf32>
    %cst_117 = arith.constant dense<0.000000e+00> : vector<8xf32>
    %244 = vector.multi_reduction <add>, %243, %cst_117 [1] : vector<8x8xf32> to vector<8xf32>
    %245 = vector.shape_cast %244 : vector<8xf32> to vector<8x1xf32>
    %246 = tpu.reciprocal %245 {approx = true} : vector<8x1xf32> -> vector<8x1xf32>
    %247 = vector.broadcast %246 : vector<8x1xf32> to vector<8x8xf32>
    %248 = arith.mulf %243, %247 : vector<8x8xf32>
    %249 = vector.broadcast %231 : vector<1x32xf32> to vector<8x32xf32>
    %250 = arith.mulf %195, %249 : vector<8x32xf32>
    %cst_118 = arith.constant dense<0.000000e+00> : vector<8x32xf32>
    %251 = tpu.matmul %248, %250, %cst_118 {dimension_numbers = #tpu.dot_dimension_numbers<[1], [0], [0], [1], [0, 0, 1, 1], [], []>} : vector<8x8xf32>, vector<8x32xf32>, vector<8x32xf32> -> vector<8x32xf32>
    %252 = arith.addf %224, %251 : vector<8x32xf32>
    %c1_119 = arith.constant 1 : index
    %c0_120 = arith.constant 0 : index
    %c0_121 = arith.constant 0 : index
    %253 = vector.load %arg9[%c1_119, %c0_120, %c0_121] : memref<2x32x32xf32, #tpu.memory_space<vmem>>, vector<1x32x32xf32>
    %254 = vector.shape_cast %253 : vector<1x32x32xf32> to vector<32x32xf32>
    %cst_122 = arith.constant dense<0.000000e+00> : vector<8x32xf32>
    %255 = tpu.matmul %252, %254, %cst_122 {dimension_numbers = #tpu.dot_dimension_numbers<[1], [0], [0], [1], [0, 0, 1, 1], [], []>} : vector<8x32xf32>, vector<32x32xf32>, vector<8x32xf32> -> vector<8x32xf32>
    %c1_123 = arith.constant 1 : index
    %c0_124 = arith.constant 0 : index
    %c0_125 = arith.constant 0 : index
    %256 = vector.load %arg10[%c1_123, %c0_124, %c0_125] : memref<2x1x32xf32, #tpu.memory_space<vmem>>, vector<1x1x32xf32>
    %257 = vector.shape_cast %256 : vector<1x1x32xf32> to vector<1x32xf32>
    %258 = vector.broadcast %257 : vector<1x32xf32> to vector<8x32xf32>
    %259 = arith.addf %255, %258 : vector<8x32xf32>
    %260 = arith.addf %174, %259 : vector<8x32xf32>
    %c1_126 = arith.constant 1 : index
    %c0_127 = arith.constant 0 : index
    %c0_128 = arith.constant 0 : index
    %261 = vector.load %arg11[%c1_126, %c0_127, %c0_128] : memref<2x1x32xf32, #tpu.memory_space<vmem>>, vector<1x1x32xf32>
    %262 = vector.shape_cast %261 : vector<1x1x32xf32> to vector<1x32xf32>
    %c1_129 = arith.constant 1 : index
    %c0_130 = arith.constant 0 : index
    %c0_131 = arith.constant 0 : index
    %263 = vector.load %arg12[%c1_129, %c0_130, %c0_131] : memref<2x1x32xf32, #tpu.memory_space<vmem>>, vector<1x1x32xf32>
    %264 = vector.shape_cast %263 : vector<1x1x32xf32> to vector<1x32xf32>
    %cst_132 = arith.constant dense<0.000000e+00> : vector<8xf32>
    %265 = vector.multi_reduction <add>, %260, %cst_132 [1] : vector<8x32xf32> to vector<8xf32>
    %266 = vector.shape_cast %265 : vector<8xf32> to vector<8x1xf32>
    %cst_133 = arith.constant 3.200000e+01 : f32
    %267 = vector.broadcast %cst_133 : f32 to vector<8x1xf32>
    %268 = arith.divf %266, %267 : vector<8x1xf32>
    %269 = vector.broadcast %268 : vector<8x1xf32> to vector<8x32xf32>
    %270 = arith.subf %260, %269 : vector<8x32xf32>
    %271 = vector.broadcast %268 : vector<8x1xf32> to vector<8x32xf32>
    %272 = arith.subf %260, %271 : vector<8x32xf32>
    %273 = arith.mulf %270, %272 : vector<8x32xf32>
    %cst_134 = arith.constant dense<0.000000e+00> : vector<8xf32>
    %274 = vector.multi_reduction <add>, %273, %cst_134 [1] : vector<8x32xf32> to vector<8xf32>
    %275 = vector.shape_cast %274 : vector<8xf32> to vector<8x1xf32>
    %cst_135 = arith.constant 3.200000e+01 : f32
    %276 = vector.broadcast %cst_135 : f32 to vector<8x1xf32>
    %277 = arith.divf %275, %276 : vector<8x1xf32>
    %278 = vector.broadcast %268 : vector<8x1xf32> to vector<8x32xf32>
    %279 = arith.subf %260, %278 : vector<8x32xf32>
    %cst_136 = arith.constant 9.99999996E-13 : f32
    %280 = vector.broadcast %cst_136 : f32 to vector<8x1xf32>
    %281 = arith.addf %277, %280 : vector<8x1xf32>
    %282 = math.rsqrt %281 : vector<8x1xf32>
    %283 = vector.broadcast %282 : vector<8x1xf32> to vector<8x32xf32>
    %284 = arith.mulf %279, %283 : vector<8x32xf32>
    %285 = vector.broadcast %262 : vector<1x32xf32> to vector<8x32xf32>
    %286 = arith.mulf %284, %285 : vector<8x32xf32>
    %287 = vector.broadcast %264 : vector<1x32xf32> to vector<8x32xf32>
    %288 = arith.addf %286, %287 : vector<8x32xf32>
    %c1_137 = arith.constant 1 : index
    %c0_138 = arith.constant 0 : index
    %c0_139 = arith.constant 0 : index
    %289 = vector.load %arg13[%c1_137, %c0_138, %c0_139] : memref<2x32x64xf32, #tpu.memory_space<vmem>>, vector<1x32x64xf32>
    %290 = vector.shape_cast %289 : vector<1x32x64xf32> to vector<32x64xf32>
    %cst_140 = arith.constant dense<0.000000e+00> : vector<8x64xf32>
    %291 = tpu.matmul %288, %290, %cst_140 {dimension_numbers = #tpu.dot_dimension_numbers<[1], [0], [0], [1], [0, 0, 1, 1], [], []>} : vector<8x32xf32>, vector<32x64xf32>, vector<8x64xf32> -> vector<8x64xf32>
    %c1_141 = arith.constant 1 : index
    %c0_142 = arith.constant 0 : index
    %c0_143 = arith.constant 0 : index
    %292 = vector.load %arg14[%c1_141, %c0_142, %c0_143] : memref<2x1x64xf32, #tpu.memory_space<vmem>>, vector<1x1x64xf32>
    %293 = vector.shape_cast %292 : vector<1x1x64xf32> to vector<1x64xf32>
    %294 = vector.broadcast %293 : vector<1x64xf32> to vector<8x64xf32>
    %295 = arith.addf %291, %294 : vector<8x64xf32>
    %296 = arith.mulf %295, %295 : vector<8x64xf32>
    %297 = arith.mulf %295, %296 : vector<8x64xf32>
    %cst_144 = arith.constant 4.471500e-02 : f32
    %298 = vector.broadcast %cst_144 : f32 to vector<8x64xf32>
    %299 = arith.mulf %298, %297 : vector<8x64xf32>
    %300 = arith.addf %295, %299 : vector<8x64xf32>
    %cst_145 = arith.constant 0.797884583 : f32
    %301 = vector.broadcast %cst_145 : f32 to vector<8x64xf32>
    %302 = arith.mulf %301, %300 : vector<8x64xf32>
    %303 = math.tanh %302 : vector<8x64xf32>
    %cst_146 = arith.constant 1.000000e+00 : f32
    %304 = vector.broadcast %cst_146 : f32 to vector<8x64xf32>
    %305 = arith.addf %304, %303 : vector<8x64xf32>
    %cst_147 = arith.constant 5.000000e-01 : f32
    %306 = vector.broadcast %cst_147 : f32 to vector<8x64xf32>
    %307 = arith.mulf %306, %305 : vector<8x64xf32>
    %308 = arith.mulf %295, %307 : vector<8x64xf32>
    %c1_148 = arith.constant 1 : index
    %c0_149 = arith.constant 0 : index
    %c0_150 = arith.constant 0 : index
    %309 = vector.load %arg15[%c1_148, %c0_149, %c0_150] : memref<2x64x32xf32, #tpu.memory_space<vmem>>, vector<1x64x32xf32>
    %310 = vector.shape_cast %309 : vector<1x64x32xf32> to vector<64x32xf32>
    %cst_151 = arith.constant dense<0.000000e+00> : vector<8x32xf32>
    %311 = tpu.matmul %308, %310, %cst_151 {dimension_numbers = #tpu.dot_dimension_numbers<[1], [0], [0], [1], [0, 0, 1, 1], [], []>} : vector<8x64xf32>, vector<64x32xf32>, vector<8x32xf32> -> vector<8x32xf32>
    %c1_152 = arith.constant 1 : index
    %c0_153 = arith.constant 0 : index
    %c0_154 = arith.constant 0 : index
    %312 = vector.load %arg16[%c1_152, %c0_153, %c0_154] : memref<2x1x32xf32, #tpu.memory_space<vmem>>, vector<1x1x32xf32>
    %313 = vector.shape_cast %312 : vector<1x1x32xf32> to vector<1x32xf32>
    %314 = vector.broadcast %313 : vector<1x32xf32> to vector<8x32xf32>
    %315 = arith.addf %311, %314 : vector<8x32xf32>
    %316 = arith.addf %288, %315 : vector<8x32xf32>
    %c1_155 = arith.constant 1 : index
    %c0_156 = arith.constant 0 : index
    %c0_157 = arith.constant 0 : index
    %317 = vector.load %arg17[%c1_155, %c0_156, %c0_157] : memref<2x1x32xf32, #tpu.memory_space<vmem>>, vector<1x1x32xf32>
    %318 = vector.shape_cast %317 : vector<1x1x32xf32> to vector<1x32xf32>
    %c1_158 = arith.constant 1 : index
    %c0_159 = arith.constant 0 : index
    %c0_160 = arith.constant 0 : index
    %319 = vector.load %arg18[%c1_158, %c0_159, %c0_160] : memref<2x1x32xf32, #tpu.memory_space<vmem>>, vector<1x1x32xf32>
    %320 = vector.shape_cast %319 : vector<1x1x32xf32> to vector<1x32xf32>
    %cst_161 = arith.constant dense<0.000000e+00> : vector<8xf32>
    %321 = vector.multi_reduction <add>, %316, %cst_161 [1] : vector<8x32xf32> to vector<8xf32>
    %322 = vector.shape_cast %321 : vector<8xf32> to vector<8x1xf32>
    %cst_162 = arith.constant 3.200000e+01 : f32
    %323 = vector.broadcast %cst_162 : f32 to vector<8x1xf32>
    %324 = arith.divf %322, %323 : vector<8x1xf32>
    %325 = vector.broadcast %324 : vector<8x1xf32> to vector<8x32xf32>
    %326 = arith.subf %316, %325 : vector<8x32xf32>
    %327 = vector.broadcast %324 : vector<8x1xf32> to vector<8x32xf32>
    %328 = arith.subf %316, %327 : vector<8x32xf32>
    %329 = arith.mulf %326, %328 : vector<8x32xf32>
    %cst_163 = arith.constant dense<0.000000e+00> : vector<8xf32>
    %330 = vector.multi_reduction <add>, %329, %cst_163 [1] : vector<8x32xf32> to vector<8xf32>
    %331 = vector.shape_cast %330 : vector<8xf32> to vector<8x1xf32>
    %cst_164 = arith.constant 3.200000e+01 : f32
    %332 = vector.broadcast %cst_164 : f32 to vector<8x1xf32>
    %333 = arith.divf %331, %332 : vector<8x1xf32>
    %334 = vector.broadcast %324 : vector<8x1xf32> to vector<8x32xf32>
    %335 = arith.subf %316, %334 : vector<8x32xf32>
    %cst_165 = arith.constant 9.99999996E-13 : f32
    %336 = vector.broadcast %cst_165 : f32 to vector<8x1xf32>
    %337 = arith.addf %333, %336 : vector<8x1xf32>
    %338 = math.rsqrt %337 : vector<8x1xf32>
    %339 = vector.broadcast %338 : vector<8x1xf32> to vector<8x32xf32>
    %340 = arith.mulf %335, %339 : vector<8x32xf32>
    %341 = vector.broadcast %318 : vector<1x32xf32> to vector<8x32xf32>
    %342 = arith.mulf %340, %341 : vector<8x32xf32>
    %343 = vector.broadcast %320 : vector<1x32xf32> to vector<8x32xf32>
    %344 = arith.addf %342, %343 : vector<8x32xf32>
    %345 = vector.extract_strided_slice %344 {offsets = [0, 0], sizes = [1, 32], strides = [1, 1]} : vector<8x32xf32> to vector<1x32xf32>
    %c0_166 = arith.constant 0 : index
    %c0_167 = arith.constant 0 : index
    %346 = vector.load %arg19[%c0_166, %c0_167] : memref<32x32xf32, #tpu.memory_space<vmem>>, vector<32x32xf32>
    %cst_168 = arith.constant dense<0.000000e+00> : vector<1x32xf32>
    %347 = tpu.matmul %345, %346, %cst_168 {dimension_numbers = #tpu.dot_dimension_numbers<[1], [0], [0], [1], [0, 0, 1, 1], [], []>} : vector<1x32xf32>, vector<32x32xf32>, vector<1x32xf32> -> vector<1x32xf32>
    %c0_169 = arith.constant 0 : index
    %c0_170 = arith.constant 0 : index
    %348 = vector.load %arg20[%c0_169, %c0_170] : memref<1x32xf32, #tpu.memory_space<vmem>>, vector<1x32xf32>
    %349 = arith.addf %347, %348 : vector<1x32xf32>
    %350 = math.tanh %349 : vector<1x32xf32>
    %c0_171 = arith.constant 0 : index
    %c0_172 = arith.constant 0 : index
    %351 = vector.load %arg21[%c0_171, %c0_172] : memref<32x128xf32, #tpu.memory_space<vmem>>, vector<32x128xf32>
    %cst_173 = arith.constant dense<0.000000e+00> : vector<1x128xf32>
    %352 = tpu.matmul %350, %351, %cst_173 {dimension_numbers = #tpu.dot_dimension_numbers<[1], [0], [0], [1], [0, 0, 1, 1], [], []>} : vector<1x32xf32>, vector<32x128xf32>, vector<1x128xf32> -> vector<1x128xf32>
    %c0_174 = arith.constant 0 : index
    %c0_175 = arith.constant 0 : index
    %353 = vector.load %arg22[%c0_174, %c0_175] : memref<1x128xf32, #tpu.memory_space<vmem>>, vector<1x128xf32>
    %354 = arith.addf %352, %353 : vector<1x128xf32>
    %c0_176 = arith.constant 0 : index
    %c0_177 = arith.constant 0 : index
    %c0_178 = arith.constant 0 : index
    %355 = vector.load %arg23[%c0_176, %c0_177, %c0_178] : memref<1x1x128xf32, #tpu.memory_space<vmem>>, vector<1x1x128xf32>
    %356 = vector.shape_cast %355 : vector<1x1x128xf32> to vector<1x128xf32>
    %357 = vector.shape_cast %354 : vector<1x128xf32> to vector<1x1x128xf32>
    tpu.vector_store %arg23[%c0_176, %c0_177, %c0_178], %357 {strides = array<i32>} : memref<1x1x128xf32, #tpu.memory_space<vmem>>, vector<1x1x128xf32>,
    return
  }
  func.func @transform_0(%arg0: i32) -> (i32, i32, i32) {
    %c0_i32 = arith.constant 0 : i32
    %c0_i32_0 = arith.constant 0 : i32
    %c0_i32_1 = arith.constant 0 : i32
    return %arg0, %c0_i32, %c0_i32_0 : i32, i32, i32
  }
  func.func @transform_1(%arg0: i32) -> (i32, i32, i32) {
    %c0_i32 = arith.constant 0 : i32
    %c0_i32_0 = arith.constant 0 : i32
    %c0_i32_1 = arith.constant 0 : i32
    return %arg0, %c0_i32, %c0_i32_0 : i32, i32, i32
  }
  func.func @transform_2(%arg0: i32) -> (i32, i32, i32) {
    %c0_i32 = arith.constant 0 : i32
    %c0_i32_0 = arith.constant 0 : i32
    %c0_i32_1 = arith.constant 0 : i32
    %c0_i32_2 = arith.constant 0 : i32
    return %c0_i32, %c0_i32_0, %c0_i32_1 : i32, i32, i32
  }
  func.func @transform_3(%arg0: i32) -> (i32, i32, i32) {
    %c0_i32 = arith.constant 0 : i32
    %c0_i32_0 = arith.constant 0 : i32
    %c0_i32_1 = arith.constant 0 : i32
    %c0_i32_2 = arith.constant 0 : i32
    return %c0_i32, %c0_i32_0, %c0_i32_1 : i32, i32, i32
  }
  func.func @transform_4(%arg0: i32) -> (i32, i32, i32) {
    %c0_i32 = arith.constant 0 : i32
    %c0_i32_0 = arith.constant 0 : i32
    %c0_i32_1 = arith.constant 0 : i32
    %c0_i32_2 = arith.constant 0 : i32
    return %c0_i32, %c0_i32_0, %c0_i32_1 : i32, i32, i32
  }
  func.func @transform_5(%arg0: i32) -> (i32, i32, i32) {
    %c0_i32 = arith.constant 0 : i32
    %c0_i32_0 = arith.constant 0 : i32
    %c0_i32_1 = arith.constant 0 : i32
    %c0_i32_2 = arith.constant 0 : i32
    return %c0_i32, %c0_i32_0, %c0_i32_1 : i32, i32, i32
  }
  func.func @transform_6(%arg0: i32) -> (i32, i32, i32) {
    %c0_i32 = arith.constant 0 : i32
    %c0_i32_0 = arith.constant 0 : i32
    %c0_i32_1 = arith.constant 0 : i32
    %c0_i32_2 = arith.constant 0 : i32
    return %c0_i32, %c0_i32_0, %c0_i32_1 : i32, i32, i32
  }
  func.func @transform_7(%arg0: i32) -> (i32, i32, i32) {
    %c0_i32 = arith.constant 0 : i32
    %c0_i32_0 = arith.constant 0 : i32
    %c0_i32_1 = arith.constant 0 : i32
    %c0_i32_2 = arith.constant 0 : i32
    return %c0_i32, %c0_i32_0, %c0_i32_1 : i32, i32, i32
  }
  func.func @transform_8(%arg0: i32) -> (i32, i32, i32) {
    %c0_i32 = arith.constant 0 : i32
    %c0_i32_0 = arith.constant 0 : i32
    %c0_i32_1 = arith.constant 0 : i32
    %c0_i32_2 = arith.constant 0 : i32
    return %c0_i32, %c0_i32_0, %c0_i32_1 : i32, i32, i32
  }
  func.func @transform_9(%arg0: i32) -> (i32, i32, i32) {
    %c0_i32 = arith.constant 0 : i32
    %c0_i32_0 = arith.constant 0 : i32
    %c0_i32_1 = arith.constant 0 : i32
    %c0_i32_2 = arith.constant 0 : i32
    return %c0_i32, %c0_i32_0, %c0_i32_1 : i32, i32, i32
  }
  func.func @transform_10(%arg0: i32) -> (i32, i32, i32) {
    %c0_i32 = arith.constant 0 : i32
    %c0_i32_0 = arith.constant 0 : i32
    %c0_i32_1 = arith.constant 0 : i32
    %c0_i32_2 = arith.constant 0 : i32
    return %c0_i32, %c0_i32_0, %c0_i32_1 : i32, i32, i32
  }
  func.func @transform_11(%arg0: i32) -> (i32, i32, i32) {
    %c0_i32 = arith.constant 0 : i32
    %c0_i32_0 = arith.constant 0 : i32
    %c0_i32_1 = arith.constant 0 : i32
    %c0_i32_2 = arith.constant 0 : i32
    return %c0_i32, %c0_i32_0, %c0_i32_1 : i32, i32, i32
  }
  func.func @transform_12(%arg0: i32) -> (i32, i32, i32) {
    %c0_i32 = arith.constant 0 : i32
    %c0_i32_0 = arith.constant 0 : i32
    %c0_i32_1 = arith.constant 0 : i32
    %c0_i32_2 = arith.constant 0 : i32
    return %c0_i32, %c0_i32_0, %c0_i32_1 : i32, i32, i32
  }
  func.func @transform_13(%arg0: i32) -> (i32, i32, i32) {
    %c0_i32 = arith.constant 0 : i32
    %c0_i32_0 = arith.constant 0 : i32
    %c0_i32_1 = arith.constant 0 : i32
    %c0_i32_2 = arith.constant 0 : i32
    return %c0_i32, %c0_i32_0, %c0_i32_1 : i32, i32, i32
  }
  func.func @transform_14(%arg0: i32) -> (i32, i32, i32) {
    %c0_i32 = arith.constant 0 : i32
    %c0_i32_0 = arith.constant 0 : i32
    %c0_i32_1 = arith.constant 0 : i32
    %c0_i32_2 = arith.constant 0 : i32
    return %c0_i32, %c0_i32_0, %c0_i32_1 : i32, i32, i32
  }
  func.func @transform_15(%arg0: i32) -> (i32, i32, i32) {
    %c0_i32 = arith.constant 0 : i32
    %c0_i32_0 = arith.constant 0 : i32
    %c0_i32_1 = arith.constant 0 : i32
    %c0_i32_2 = arith.constant 0 : i32
    return %c0_i32, %c0_i32_0, %c0_i32_1 : i32, i32, i32
  }
  func.func @transform_16(%arg0: i32) -> (i32, i32, i32) {
    %c0_i32 = arith.constant 0 : i32
    %c0_i32_0 = arith.constant 0 : i32
    %c0_i32_1 = arith.constant 0 : i32
    %c0_i32_2 = arith.constant 0 : i32
    return %c0_i32, %c0_i32_0, %c0_i32_1 : i32, i32, i32
  }
  func.func @transform_17(%arg0: i32) -> (i32, i32, i32) {
    %c0_i32 = arith.constant 0 : i32
    %c0_i32_0 = arith.constant 0 : i32
    %c0_i32_1 = arith.constant 0 : i32
    %c0_i32_2 = arith.constant 0 : i32
    return %c0_i32, %c0_i32_0, %c0_i32_1 : i32, i32, i32
  }
  func.func @transform_18(%arg0: i32) -> (i32, i32) {
    %c0_i32 = arith.constant 0 : i32
    %c0_i32_0 = arith.constant 0 : i32
    %c0_i32_1 = arith.constant 0 : i32
    return %c0_i32, %c0_i32_0 : i32, i32
  }
  func.func @transform_19(%arg0: i32) -> (i32, i32) {
    %c0_i32 = arith.constant 0 : i32
    %c0_i32_0 = arith.constant 0 : i32
    %c0_i32_1 = arith.constant 0 : i32
    return %c0_i32, %c0_i32_0 : i32, i32
  }
  func.func @transform_20(%arg0: i32) -> (i32, i32) {
    %c0_i32 = arith.constant 0 : i32
    %c0_i32_0 = arith.constant 0 : i32
    %c0_i32_1 = arith.constant 0 : i32
    return %c0_i32, %c0_i32_0 : i32, i32
  }
  func.func @transform_21(%arg0: i32) -> (i32, i32) {
    %c0_i32 = arith.constant 0 : i32
    %c0_i32_0 = arith.constant 0 : i32
    %c0_i32_1 = arith.constant 0 : i32
    return %c0_i32, %c0_i32_0 : i32, i32
  }
  func.func @transform_22(%arg0: i32) -> (i32, i32, i32) {
    %c0_i32 = arith.constant 0 : i32
    %c0_i32_0 = arith.constant 0 : i32
    %c0_i32_1 = arith.constant 0 : i32
    return %arg0, %c0_i32, %c0_i32_0 : i32, i32, i32
  }
}

</mosaic_0001>

<bundles_post_ra>
// kernel: forward.1
= control target key start
LH: loop header
LB: loop body
LE: loop exit
PB: predicated region body
PF: predicated region fallthrough
CT: control target
= control target key end

     0   :  { %s2243_s0 = inlined_call_operand.vmem [shape: f32[2,8,32], index: 0, kind: input, shape index: {}]   ;;  %s2244_s1 = inlined_call_operand.vmem [shape: f32[2,1,8], index: 1, kind: input, shape index: {}]   ;;  %s2245_s2 = inlined_call_operand.vmem [shape: f32[2,32,32], index: 2, kind: input, shape index: {}]   ;;  %s2246_s3 = inlined_call_operand.vmem [shape: f32[2,1,32], index: 3, kind: input, shape index: {}]   ;;  %s2247_s4 = inlined_call_operand.vmem [shape: f32[2,32,32], index: 4, kind: input, shape index: {}]   ;;  %s2248_s5 = inlined_call_operand.vmem [shape: f32[2,1,32], index: 5, kind: input, shape index: {}]   ;;  %s2249_s6 = inlined_call_operand.vmem [shape: f32[2,32,32], index: 6, kind: input, shape index: {}]   ;;  %s2250_s7 = inlined_call_operand.vmem [shape: f32[2,1,32], index: 7, kind: input, shape index: {}]   ;;  %s2251_s8 = inlined_call_operand.vmem [shape: f32[2,32,32], index: 8, kind: input, shape index: {}]   ;;  %s2252_s9 = inlined_call_operand.vmem [shape: f32[2,1,32], index: 9, kind: input, shape index: {}]   ;;  %s2253_s10 = inlined_call_operand.vmem [shape: f32[2,1,32], index: 10, kind: input, shape index: {}]   ;;  %s2254_s11 = inlined_call_operand.vmem [shape: f32[2,1,32], index: 11, kind: input, shape index: {}]   ;;  %s2255_s12 = inlined_call_operand.vmem [shape: f32[2,32,64], index: 12, kind: input, shape index: {}]   ;;  %s2256_s13 = inlined_call_operand.vmem [shape: f32[2,1,64], index: 13, kind: input, shape index: {}]   ;;  %s2257_s14 = inlined_call_operand.vmem [shape: f32[2,64,32], index: 14, kind: input, shape index: {}]   ;;  %s2258_s15 = inlined_call_operand.vmem [shape: f32[2,1,32], index: 15, kind: input, shape index: {}]   ;;  %s2259_s16 = inlined_call_operand.vmem [shape: f32[2,1,32], index: 16, kind: input, shape index: {}]   ;;  %s2260_s17 = inlined_call_operand.vmem [shape: f32[2,1,32], index: 17, kind: input, shape index: {}]   ;;  %s2261_s18 = inlined_call_operand.vmem [shape: f32[32,32], index: 18, kind: input, shape index: {}]   ;;  %s2262_s19 = inlined_call_operand.vmem [shape: f32[1,32], index: 19, kind: input, shape index: {}]   ;;  %s2263_s20 = inlined_call_operand.vmem [shape: f32[32,128], index: 20, kind: input, shape index: {}]   ;;  %s2264_s21 = inlined_call_operand.vmem [shape: f32[1,128], index: 21, kind: input, shape index: {}]   ;;  %s2265_s22 = inlined_call_operand.vmem [shape: f32[2,1,128], index: 22, kind: output, shape index: {}]  }
   0x1   :  { %2272 = sst [smem:[#allocation3_spill]] %s2243_s0 }
   0x2   :  { %2273 = sst [smem:[#allocation4_spill]] %s2244_s1 }
   0x3   :  { %2274 = sst [smem:[#allocation5_spill]] %s2245_s2 }
   0x4   :  { %2275 = sst [smem:[#allocation6_spill]] %s2246_s3  ;;  %s1878_s3 = smov 0  }
   0x5   :  { %2276 = sst [smem:[#allocation7_spill]] %s2247_s4 }
   0x6   :  { %2277 = sst [smem:[#allocation8_spill]] %s2248_s5 }
   0x7   :  { %2278 = sst [smem:[#allocation9_spill]] %s2249_s6 }
   0x8   :  { %2279 = sst [smem:[#allocation10_spill]] %s2265_s22 }
   0x9 LB: > { %2280 = sst [smem:[#allocation2_spill]] %s1759_s3  ;;  %s1616_s28 = sadd.s32 4294967295, %s1759_s3   ;;  %s1759_s3 = sphi %s1878_s3, %s32_s3  }
   0xa   : > { %p1620_p0 = scmp.ge.s32.totalorder %s1759_s3, 1  ;;  %p619_p1 = scmp.lt.s32.totalorder %s1759_s3, 3 }
   0xc   : > { %p620_p2 = pnand %p1620_p0, %p619_p1 }
   0xd   : > { %s2281_s4 = sld [smem:[#allocation7_spill]] (!%p620_p2)  ;;  %p681_p3 = scmp.lt.s32.totalorder (!%p620_p2), %s1616_s28, 1 }
   0xe   : > { %623 = sbr.rel (%p620_p2) target bundleno = 3528 (0xdc8), region = 108  ;;  %s2282_s1 = sld [smem:[#allocation5_spill]] (!%p620_p2) }
   0xf   : > { %s2283_s23 = sld [smem:[#allocation9_spill]] (!%p620_p2) }
  0x10   : > { %s2284_s24 = sld [smem:[#allocation3_spill]] (!%p620_p2) }
  0x11   : > { %s2285_s2 = sld [smem:[#allocation8_spill]] (!%p620_p2) }
  0x12   : > { %s2286_s30 = sld [smem:[#allocation6_spill]] (!%p620_p2) }
  0x13   : > { %v730_v0 = vld [vmem:[%s2281_s4 + $0x18] sm:$0xff]  ;;  %v729_v2 = vld [vmem:[%s2281_s4 + $0x10] sm:$0xff]  ;;  %v728_v4 = vld [vmem:[%s2281_s4 + $0x8] sm:$0xff]  ;;  %s2291_s28 = smov (!%p681_p3, %s1616_s28), 1  ;;  %vm703_vm0 = vcmask 261120   ;;  %v693_v13 = vlaneseq  ;;  %v1761_v19 = vmov 0.0  }
  0x14   : > { %v698_v1 = vld [vmem:[%s2282_s1 + $0x18] sm:$0xff]  ;;  %747 = vmatpush.msra.mxu1 %v730_v0  ;;  %v697_v3 = vld [vmem:[%s2282_s1 + $0x10] sm:$0xff]  ;;  %v696_v5 = vld [vmem:[%s2282_s1 + $0x8] sm:$0xff]  ;;  %s1621_s27 = sshll.u32 %s2291_s28, 3  ;;  %s2287_s25 = sld [smem:[#allocation4_spill]]  ;;  %vm820_vm5 = vcmask 64512  }
  0x15   : > { %719 = vmatpush.msra.mxu0 %v698_v1  ;;  %v758_v6 = vld [vmem:[%s2283_s23 + $0x18] sm:$0xff]  ;;  %v727_v7 = vld [vmem:[%s2281_s4] sm:$0xff]  ;;  %v757_v8 = vld [vmem:[%s2283_s23 + $0x10] sm:$0xff]  ;;  %v694_v14 = vand.u32 127, %v693_v13  ;;  %vm1045_vm10 = vcmask 523264   ;;  %s2288_s6 = sld [smem:[#allocation10_spill]] }
  0x16   : > { %748 = vmatpush.msra.mxu1 %v729_v2  ;;  %v695_v9 = vld [vmem:[%s2282_s1] sm:$0xff]  ;;  %775 = vmatpush.msra.mxu2 %v758_v6  ;;  %v756_v10 = vld [vmem:[%s2283_s23 + $0x8] sm:$0xff]  ;;  %s684_s3 = scalar_lea.vmem %s2284_s24, %s1621_s27  ;;  %v925_v56 = vld [vmem:[%s2251_s8 + $0x18] sm:$0xff] }
  0x17   : > { %720 = vmatpush.msra.mxu0 %v697_v3  ;;  %v1925_v11 = vld [vmem:[%s684_s3] sm:$0xff]  ;;  %vm833_vm1 = vcmp.ge.s32.totalorder %v694_v14, 16  ;;  %vm834_vm2 = vcmp.lt.s32.totalorder %v694_v14, 32  ;;  %vm784_vm3 = vcmp.lt.s32.totalorder %v694_v14, 16  ;;  %v924_v57 = vld [vmem:[%s2251_s8 + $0x10] sm:$0xff]  ;;  %v923_v58 = vld [vmem:[%s2251_s8 + $0x8] sm:$0xff] }
  0x18   : > { %749 = vmatpush.msra.mxu1 %v728_v4  ;;  %776 = vmatpush.msra.mxu2 %v757_v8  ;;  %v755_v12 = vld [vmem:[%s2283_s23] sm:$0xff]  ;;  %vm835_vm4 = vmand %vm833_vm1, %vm834_vm2  ;;  %v1942_v20 = vsel %vm784_vm3, 1.0, %v1761_v19  ;;  %v1762_v4 = vmov 32.0  }
  0x19   : > { %721 = vmatpush.msra.mxu0 %v696_v5  ;;  %v1700_v15 = vld [vmem:[%s2285_s2] ss:$0 sm:$0xff]  ;;  %v1944_v21 = vsel %vm835_vm4, 1.0, %v1761_v19 }
  0x1a   : > { %750 = vmatpush.msra.mxu1 %v727_v7  ;;  %777 = vmatpush.msra.mxu2 %v756_v10  ;;  %v1701_v16 = vld [vmem:[%s2286_s30] ss:$0 sm:$0xff]  ;;  %s687_s3 = scalar_lea.vmem %s2287_s25, %s2291_s28 }
  0x1b   : > { %722 = vmatpush.msra.mxu0 %v695_v9  ;;  %1623 = vmatmul.msk.f32.vlgmr.msra.gmra.mxu1 %vm703_vm0, %v1925_v11  ;;  %v1702_v26 = vld [vmem:[%s2250_s7] ss:$0 sm:$0xff]  ;;  %s690_s25 = scalar_lea.vmem %s2288_s6, %s2291_s28 }
  0x1c   : > { %1622 = vmatmul.msk.f32.vlgmr.msra.gmra.mxu0 %vm703_vm0, %v1925_v11  ;;  %778 = vmatpush.msra.mxu2 %v755_v12  ;;  %v1961_v31 = vld [vmem:[%s687_s3] ss:$0 sm:$0xff] }
  0x1d   : > { %1624 = vmatmul.msk.f32.vlgmr.msra.gmra.mxu2 %vm703_vm0, %v1925_v11  ;;  %v922_v59 = vld [vmem:[%s2251_s8] sm:$0xff] }
  0x1e   : > { %v1704_v63 = vld [vmem:[%s2252_s9] ss:$0 sm:$0xff] }
  0x1f   : > { %v993_v19 = vld [vmem:[%s2255_s12] sm:$0xff] }
  0x98   : > { %v752_v17 = vpop.f32.mrf.mxu1 }
  0x99   : > { %v724_v18 = vpop.f32.mrf.mxu0  ;;  %v753_v22 = vadd.f32 %v1700_v15, %v752_v17  ;;  %v995_v17 = vld [vmem:[%s2255_s12 + $0x10] sm:$0xff] }
  0x9a   : > { %v725_v23 = vadd.f32 %v1701_v16, %v724_v18  ;;  %v996_v16 = vld [vmem:[%s2255_s12 + $0x18] sm:$0xff]  ;;  %v994_v18 = vld [vmem:[%s2255_s12 + $0x8] sm:$0xff] }
  0x9b   : > { %1626 = vmatpush.xpose.msk.msrb.mxu2 %vm703_vm0, %v753_v22  ;;  %1629 = vmatpush.xpose.msk.msra.mxu3 %vm703_vm0, %v753_v22 }
  0x9c   : > { %v788_v24 = vmul.f32 %v1942_v20, %v725_v23  ;;  %v838_v25 = vmul.f32 %v1944_v21, %v725_v23 }
  0x9e   : > { %1627 = vmatmul.msk.f32.vlgmr.msrb.gmra.mxu2 %vm703_vm0, %v788_v24  ;;  %1630 = vmatmul.msk.f32.vlgmr.msra.gmra.mxu3 %vm703_vm0, %v838_v25 }
  0x9f   : > { %945 = vmatpush.msra.mxu2 %v925_v56  ;;  %1016 = vmatpush.msrb.mxu3 %v996_v16  ;;  %v1648_v16 = vld [vmem:[%s2283_s23 + $0x20] sm:$0xff] }
  0xa0   : > { %v780_v27 = vpop.f32.mrf.mxu2 }
  0xa1   : > { %v781_v28 = vadd.f32 %v1702_v26, %v780_v27  ;;  %946 = vmatpush.msra.mxu2 %v924_v57  ;;  %1017 = vmatpush.msrb.mxu3 %v995_v17 }
  0xa3   : > { %v875_v29 = vmul.f32 %v1944_v21, %v781_v28  ;;  %v832_v30 = vmul.f32 %v1942_v20, %v781_v28  ;;  %947 = vmatpush.msra.mxu2 %v923_v58  ;;  %1018 = vmatpush.msrb.mxu3 %v994_v18  ;;  %v1708_v58 = vld [vmem:[%s2258_s15] ss:$0 sm:$0xff] }
  0xa5   : > { %894 = vmatpush.msrb.mxu0 %v875_v29  ;;  %917 = vmatpush.msrb.mxu1 %v832_v30 }
  0xa6   : > { %948 = vmatpush.msra.mxu2 %v922_v59  ;;  %1019 = vmatpush.msrb.mxu3 %v993_v19 }
 0x121   : > { %v812_v32 = vpop.f32.mrf.mxu2  ;;  %v859_v34 = vpop.f32.mrf.mxu3 }
 0x122   : > { %v815_v33 = vmul.f32 0.25, %v812_v32  ;;  %v862_v36 = vmul.f32 0.25, %v859_v34  ;;  %v1705_v32 = vld [vmem:[%s2253_s10] ss:$0 sm:$0xff] }
 0x124   : > { %v819_v35 = vadd.f32 %v1961_v31, %v815_v33  ;;  %v863_v38 = vadd.f32 %v1961_v31, %v862_v36 }
 0x126   : > { %v821_v37 = vsel %vm820_vm5, %v819_v35, -inf  ;;  %v864_v39 = vsel %vm820_vm5, %v863_v38, -inf }
 0x127   : > { %822 = vmax.xlane.f32.xlu0 %v821_v37 }
 0x12f   : > { %865 = vmax.xlane.f32.xlu0 %v864_v39  ;;  %v1039_v39 = vld [vmem:[%s2257_s14 + $0x30] sm:$0xff] }
 0x19a   : > { %v823_v40 = vpop.xlane.xlu0 %822 }
 0x19b   : > { %v824_v41 = vsub.f32 %v819_v35, %v823_v40  ;;  %v1706_v35 = vld [vmem:[%s2254_s11] ss:$0 sm:$0xff]  ;;  %v1038_v40 = vld [vmem:[%s2257_s14 + $0x28] sm:$0xff] }
 0x19d   : > { %v825_v42 = vmul.f32 1.442695, %v824_v41  ;;  %v1037_v41 = vld [vmem:[%s2257_s14 + $0x20] sm:$0xff] }
 0x19f   : > { %1721 = vpow2.f32 %v825_v42  ;;  %v1036_v42 = vld [vmem:[%s2257_s14 + $0x18] sm:$0xff] }
 0x1a2   : > { %v866_v43 = vpop.xlane.xlu0 %865 }
 0x1a3   : > { %v867_v44 = vsub.f32 %v863_v38, %v866_v43  ;;  %v1040_v38 = vld [vmem:[%s2257_s14 + $0x38] sm:$0xff]  ;;  %v1035_v43 = vld [vmem:[%s2257_s14 + $0x10] sm:$0xff] }
 0x1a4   : > { %1057 = vmatpush.msra.mxu0 %v1040_v38  ;;  %v1713_v38 = vld [vmem:[%s2250_s7 + $0x1] ss:$0 sm:$0xff] }
 0x1a5   : > { %v1722_v45 = vpop.eup %1721  ;;  %v868_v46 = vmul.f32 1.442695, %v867_v44  ;;  %v1034_v44 = vld [vmem:[%s2257_s14 + $0x8] sm:$0xff] }
 0x1a6   : > { %v827_v47 = vsel %vm820_vm5, %v1722_v45, 0.0  ;;  %1058 = vmatpush.msra.mxu0 %v1039_v39 }
 0x1a7   : > { %1723 = vpow2.f32 %v868_v46  ;;  %828 = vadd.xlane.f32.xlu1 %v827_v47  ;;  %v1707_v46 = vld [vmem:[%s2256_s13] ss:$0 sm:$0xff] }
 0x1a8   : > { %1059 = vmatpush.msra.mxu0 %v1038_v40 }
 0x1aa   : > { %1060 = vmatpush.msra.mxu0 %v1037_v41 }
 0x1ac   : > { %1061 = vmatpush.msra.mxu0 %v1036_v42 }
 0x1ad   : > { %v1724_v48 = vpop.eup %1723 }
 0x1ae   : > { %v870_v49 = vsel %vm820_vm5, %v1724_v48, 0.0  ;;  %1062 = vmatpush.msra.mxu0 %v1035_v43 }
 0x1af   : > { %871 = vadd.xlane.f32.xlu1 %v870_v49 }
 0x1b0   : > { %1063 = vmatpush.msra.mxu0 %v1034_v44 }
 0x21a   : > { %v829_v50 = vpop.xlane.xlu1 %828 }
 0x21b   : > { %1725 = vrcp.f32 %v829_v50 }
 0x221   : > { %v1726_v51 = vpop.eup %1725 }
 0x222   : > { %v872_v52 = vpop.xlane.xlu1 %871  ;;  %v831_v53 = vmul.f32 %v1726_v51, %v1722_v45  ;;  %v1033_v45 = vld [vmem:[%s2257_s14] sm:$0xff] }
 0x223   : > { %1727 = vrcp.f32 %v872_v52  ;;  %1064 = vmatpush.msra.mxu0 %v1033_v45 }
 0x224   : > { %1632 = vmatmul.msk.f32.vlgmr.msrb.gmra.mxu1 %vm820_vm5, %v831_v53  ;;  %1729 = vrcp.f32 %v1762_v4  ;;  %v1639_v4 = vld [vmem:[%s2282_s1 + $0x38] sm:$0xff] }
 0x225   : > { %1127 = vmatpush.msra.mxu1 %v1639_v4 }
 0x229   : > { %v1728_v54 = vpop.eup %1727 }
 0x22a   : > { %v874_v55 = vmul.f32 %v1728_v54, %v1724_v48  ;;  %v1730_v5 = vpop.eup %1729 }
 0x22b   : > { %v960_v6 = vmul.f32 32.0, %v1730_v5  ;;  %vm964_vm6 = vweird.f32 %v1730_v5 }
 0x22c   : > { %1631 = vmatmul.msk.f32.vlgmr.msrb.gmra.mxu0 %vm820_vm5, %v874_v55 }
 0x22d   : > { %v961_v7 = vsub.f32 1.0, %v960_v6  ;;  %v1651_v6 = vld [vmem:[%s2283_s23 + $0x38] sm:$0xff] }
 0x22e   : > { %1187 = vmatpush.msra.mxu3 %v1651_v6  ;;  %v1662_v6 = vld [vmem:[%s2251_s8 + $0x30] sm:$0xff] }
 0x22f   : > { %v962_v8 = vmul.f32 %v1730_v5, %v961_v7  ;;  %v1638_v7 = vld [vmem:[%s2282_s1 + $0x30] sm:$0xff] }
 0x230   : > { %1128 = vmatpush.msra.mxu1 %v1638_v7  ;;  %v1661_v7 = vld [vmem:[%s2251_s8 + $0x28] sm:$0xff] }
 0x231   : > { %v963_v9 = vadd.f32 %v1730_v5, %v962_v8  ;;  %v1644_v8 = vld [vmem:[%s2281_s4 + $0x30] sm:$0xff] }
 0x233   : > { %v1989_v10 = vsel %vm964_vm6, %v1730_v5, %v963_v9  ;;  %v1645_v5 = vld [vmem:[%s2281_s4 + $0x38] sm:$0xff]  ;;  %v1650_v9 = vld [vmem:[%s2283_s23 + $0x30] sm:$0xff] }
 0x234   : > { %1157 = vmatpush.msrb.mxu2 %v1645_v5  ;;  %1188 = vmatpush.msra.mxu3 %v1650_v9  ;;  %v1663_v5 = vld [vmem:[%s2251_s8 + $0x38] sm:$0xff] }
 0x236   : > { %1158 = vmatpush.msrb.mxu2 %v1644_v8  ;;  %v1660_v8 = vld [vmem:[%s2251_s8 + $0x20] sm:$0xff] }
 0x2a1   : > { %v919_v60 = vpop.f32.mrf.mxu1 }
 0x2a9   : > { %v896_v61 = vpop.f32.mrf.mxu0 }
 0x2aa   : > { %v920_v62 = vadd.f32 %v919_v60, %v896_v61 }
 0x2ac   : > { %1633 = vmatmul.msk.f32.vlgmr.msra.gmra.mxu2 %vm703_vm0, %v920_v62 }
 0x32f   : > { %v950_v0 = vpop.f32.mrf.mxu2 }
 0x330   : > { %v951_v1 = vadd.f32 %v1704_v63, %v950_v0 }
 0x332   : > { %v953_v2 = vadd.f32 %v951_v1, %v1925_v11 }
 0x334   : > { %v956_v3 = vsel %vm703_vm0, %v953_v2, 0.0 }
 0x335   : > { %957 = vadd.xlane.f32.xlu2 %v956_v3 }
 0x3a8   : > { %v958_v12 = vpop.xlane.xlu2 %957 }
 0x3a9   : > { %v966_v13 = vmul.f32 %v1989_v10, %v958_v12  ;;  %v1637_v12 = vld [vmem:[%s2282_s1 + $0x28] sm:$0xff] }
 0x3aa   : > { %1129 = vmatpush.msra.mxu1 %v1637_v12 }
 0x3ab   : > { %v967_v14 = vsub.f32 %v953_v2, %v966_v13  ;;  %v1643_v13 = vld [vmem:[%s2281_s4 + $0x28] sm:$0xff] }
 0x3ac   : > { %1159 = vmatpush.msrb.mxu2 %v1643_v13 }
 0x3ad   : > { %v968_v15 = vmul.f32 %v967_v14, %v967_v14 }
 0x3af   : > { %v969_v11 = vsel %vm703_vm0, %v968_v15, 0.0  ;;  %v1636_v15 = vld [vmem:[%s2282_s1 + $0x20] sm:$0xff] }
 0x3b0   : > { %970 = vadd.xlane.f32.xlu2 %v969_v11  ;;  %v1642_v11 = vld [vmem:[%s2281_s4 + $0x20] sm:$0xff]  ;;  %1130 = vmatpush.msra.mxu1 %v1636_v15 }
 0x3b1   : > { %1160 = vmatpush.msrb.mxu2 %v1642_v11 }
 0x423   : > { %v971_v22 = vpop.xlane.xlu2 %970 }
 0x424   : > { %v972_v23 = vmul.f32 %v971_v22, %v1989_v10 }
 0x426   : > { %v973_v24 = vadd.f32 1e-12, %v972_v23 }
 0x428   : > { %1731 = vrsqrt.f32 %v973_v24  ;;  %vm980_vm8 = vweird.f32 %v973_v24 }
 0x42e   : > { %v1732_v25 = vpop.eup %1731 }
 0x42f   : > { %v975_v26 = vmul.f32 %v1732_v25, %v973_v24  ;;  %vm981_vm7 = vweird.f32 %v1732_v25 }
 0x430   : > { %vm982_vm9 = vmor %vm980_vm8, %vm981_vm7 }
 0x431   : > { %v976_v27 = vmul.f32 %v1732_v25, %v975_v26 }
 0x433   : > { %v977_v28 = vmul.f32 0.5, %v976_v27 }
 0x435   : > { %v978_v29 = vsub.f32 1.5, %v977_v28  ;;  %v1709_v28 = vld [vmem:[%s2259_s16] ss:$0 sm:$0xff] }
 0x437   : > { %v979_v30 = vmul.f32 %v1732_v25, %v978_v29 }
 0x439   : > { %v983_v33 = vsel %vm982_vm9, %v1732_v25, %v979_v30 }
 0x43a   : > { %v984_v34 = vmul.f32 %v983_v33, %v967_v14  ;;  %v1649_v14 = vld [vmem:[%s2283_s23 + $0x28] sm:$0xff] }
 0x43b   : > { %1189 = vmatpush.msra.mxu3 %v1649_v14  ;;  %v1714_v14 = vld [vmem:[%s2252_s9 + $0x1] ss:$0 sm:$0xff] }
 0x43c   : > { %v988_v36 = vmul.f32 %v1705_v32, %v984_v34  ;;  %v1710_v32 = vld [vmem:[%s2260_s17] ss:$0 sm:$0xff] }
 0x43d   : > { %1190 = vmatpush.msra.mxu3 %v1648_v16 }
 0x43e   : > { %v992_v37 = vadd.f32 %v1706_v35, %v988_v36  ;;  %v1711_v35 = vld [vmem:[%s2286_s30 + $0x1] ss:$0 sm:$0xff] }
 0x43f   : > { %v1712_v36 = vld [vmem:[%s2285_s2 + $0x1] ss:$0 sm:$0xff] }
 0x440   : > { %1634 = vmatmul.msk.f32.vlgmr.msrb.gmra.mxu3 %vm703_vm0, %v992_v37 }
 0x4c3   : > { %v1021_v47 = vpop.f32.mrf.mxu3 }
 0x4c4   : > { %v1022_v48 = vadd.f32 %v1707_v46, %v1021_v47 }
 0x4c6   : > { %v1024_v49 = vmul.f32 %v1022_v48, %v1022_v48 }
 0x4c8   : > { %v1025_v50 = vmul.f32 %v1024_v49, %v1022_v48 }
 0x4ca   : > { %v1026_v51 = vmul.f32 0.044715, %v1025_v50 }
 0x4cc   : > { %v1027_v52 = vadd.f32 %v1026_v51, %v1022_v48 }
 0x4ce   : > { %v1028_v53 = vmul.f32 0.7978846, %v1027_v52 }
 0x4d0   : > { %1733 = vtanh.f32 %v1028_v53 }
 0x4d6   : > { %v1734_v54 = vpop.eup %1733 }
 0x4d7   : > { %v1030_v55 = vadd.f32 1.0, %v1734_v54 }
 0x4d9   : > { %v1031_v56 = vmul.f32 0.5, %v1030_v55 }
 0x4db   : > { %v1032_v57 = vmul.f32 %v1031_v56, %v1022_v48 }
 0x4dd   : > { %1635 = vmatmul.msk.f32.vlgmr.msra.gmra.mxu0 %vm1045_vm10, %v1032_v57 }
 0x55a   : > { %v1066_v59 = vpop.f32.mrf.mxu0 }
 0x55b   : > { %v1067_v60 = vadd.f32 %v1708_v58, %v1066_v59 }
 0x55d   : > { %v1069_v61 = vadd.f32 %v1067_v60, %v992_v37 }
 0x55f   : > { %v1072_v62 = vsel %vm703_vm0, %v1069_v61, 0.0 }
 0x560   : > { %1073 = vadd.xlane.f32.xlu0 %v1072_v62 }
 0x5d3   : > { %v1074_v63 = vpop.xlane.xlu0 %1073 }
 0x5d4   : > { %v1075_v0 = vmul.f32 %v1074_v63, %v1989_v10 }
 0x5d6   : > { %v1076_v1 = vsub.f32 %v1069_v61, %v1075_v0 }
 0x5d8   : > { %v1077_v2 = vmul.f32 %v1076_v1, %v1076_v1 }
 0x5da   : > { %v1078_v3 = vsel %vm703_vm0, %v1077_v2, 0.0 }
 0x5db   : > { %1079 = vadd.xlane.f32.xlu1 %v1078_v3 }
 0x64e   : > { %v1080_v17 = vpop.xlane.xlu1 %1079 }
 0x64f   : > { %v1081_v18 = vmul.f32 %v1080_v17, %v1989_v10 }
 0x651   : > { %v1082_v19 = vadd.f32 1e-12, %v1081_v18 }
 0x653   : > { %1735 = vrsqrt.f32 %v1082_v19  ;;  %vm1089_vm12 = vweird.f32 %v1082_v19 }
 0x659   : > { %v1736_v22 = vpop.eup %1735 }
 0x65a   : > { %v1084_v23 = vmul.f32 %v1736_v22, %v1082_v19  ;;  %vm1090_vm11 = vweird.f32 %v1736_v22 }
 0x65b   : > { %vm1091_vm13 = vmor %vm1089_vm12, %vm1090_vm11 }
 0x65c   : > { %v1085_v24 = vmul.f32 %v1736_v22, %v1084_v23 }
 0x65e   : > { %v1086_v25 = vmul.f32 0.5, %v1085_v24 }
 0x660   : > { %v1087_v26 = vsub.f32 1.5, %v1086_v25  ;;  %v1671_v25 = vld [vmem:[%s2255_s12 + $0x38] sm:$0xff] }
 0x662   : > { %v1088_v27 = vmul.f32 %v1736_v22, %v1087_v26  ;;  %v1670_v26 = vld [vmem:[%s2255_s12 + $0x30] sm:$0xff] }
 0x664   : > { %v1092_v29 = vsel %vm1091_vm13, %v1736_v22, %v1088_v27  ;;  %v1669_v27 = vld [vmem:[%s2255_s12 + $0x28] sm:$0xff] }
 0x665   : > { %v1093_v30 = vmul.f32 %v1092_v29, %v1076_v1 }
 0x667   : > { %v1097_v33 = vmul.f32 %v1709_v28, %v1093_v30  ;;  %v1668_v28 = vld [vmem:[%s2255_s12 + $0x20] sm:$0xff] }
 0x669   : > { %v2090_v34 = vadd.f32 %v1710_v32, %v1097_v33 }
 0x66b   : > { %1641 = vmatmul.msk.f32.vlgmr.msra.gmra.mxu1 %vm703_vm0, %v2090_v34  ;;  %1647 = vmatmul.msk.f32.vlgmr.msrb.gmra.mxu2 %vm703_vm0, %v2090_v34 }
 0x66c   : > { %1653 = vmatmul.msk.f32.vlgmr.msra.gmra.mxu3 %vm703_vm0, %v2090_v34 }
 0x6e8   : > { %v1132_v37 = vpop.f32.mrf.mxu1 }
 0x6e9   : > { %v1133_v40 = vadd.f32 %v1711_v35, %v1132_v37 }
 0x6eb   : > { %v1195_v46 = vmul.f32 %v1942_v20, %v1133_v40  ;;  %v1236_v47 = vmul.f32 %v1944_v21, %v1133_v40 }
 0x6ee   : > { %v1162_v39 = vpop.f32.mrf.mxu2 }
 0x6ef   : > { %v1163_v41 = vadd.f32 %v1712_v36, %v1162_v39  ;;  %v1192_v42 = vpop.f32.mrf.mxu3  ;;  %v1715_v39 = vld [vmem:[%s2253_s10 + $0x1] ss:$0 sm:$0xff] }
 0x6f0   : > { %v1193_v43 = vadd.f32 %v1713_v38, %v1192_v42  ;;  %v1716_v42 = vld [vmem:[%s2254_s11 + $0x1] ss:$0 sm:$0xff] }
 0x6f1   : > { %1654 = vmatpush.xpose.msk.msrb.mxu1 %vm703_vm0, %v1163_v41  ;;  %1656 = vmatpush.xpose.msk.msra.mxu2 %vm703_vm0, %v1163_v41 }
 0x6f2   : > { %v1235_v44 = vmul.f32 %v1942_v20, %v1193_v43  ;;  %v1273_v45 = vmul.f32 %v1944_v21, %v1193_v43 }
 0x6f4   : > { %1292 = vmatpush.msrb.mxu3 %v1273_v45  ;;  %1315 = vmatpush.msrb.mxu0 %v1235_v44  ;;  %v1681_v45 = vld [vmem:[%s2257_s14 + $0x78] sm:$0xff] }
 0x6f5   : > { %1655 = vmatmul.msk.f32.vlgmr.msrb.gmra.mxu1 %vm703_vm0, %v1195_v46  ;;  %1657 = vmatmul.msk.f32.vlgmr.msra.gmra.mxu2 %vm703_vm0, %v1236_v47  ;;  %v1680_v46 = vld [vmem:[%s2257_s14 + $0x70] sm:$0xff]  ;;  %v1679_v47 = vld [vmem:[%s2257_s14 + $0x68] sm:$0xff] }
 0x6f6   : > { %1345 = vmatpush.msra.mxu1 %v1663_v5  ;;  %1413 = vmatpush.msrb.mxu2 %v1671_v25 }
 0x6f7   : > { %1455 = vmatpush.msra.mxu3 %v1681_v45 }
 0x6f8   : > { %1346 = vmatpush.msra.mxu1 %v1662_v6  ;;  %1414 = vmatpush.msrb.mxu2 %v1670_v26 }
 0x6f9   : > { %1456 = vmatpush.msra.mxu3 %v1680_v46 }
 0x6fa   : > { %1347 = vmatpush.msra.mxu1 %v1661_v7  ;;  %1415 = vmatpush.msrb.mxu2 %v1669_v27 }
 0x6fb   : > { %1457 = vmatpush.msra.mxu3 %v1679_v47 }
 0x6fc   : > { %1348 = vmatpush.msra.mxu1 %v1660_v8  ;;  %1416 = vmatpush.msrb.mxu2 %v1668_v28  ;;  %v1505_v8 = vld [vmem:[%s2261_s18 + $0x18] sm:$0xff] }
 0x6fd   : > { %1522 = vmatpush.msra.mxu0 %v1505_v8 }
 0x772   : > { %v1219_v48 = vpop.f32.mrf.mxu1 }
 0x773   : > { %v1222_v49 = vmul.f32 0.25, %v1219_v48  ;;  %v1678_v48 = vld [vmem:[%s2257_s14 + $0x60] sm:$0xff] }
 0x774   : > { %1458 = vmatpush.msra.mxu3 %v1678_v48 }
 0x775   : > { %v1223_v50 = vadd.f32 %v1961_v31, %v1222_v49  ;;  %v1677_v49 = vld [vmem:[%s2257_s14 + $0x58] sm:$0xff] }
 0x776   : > { %1459 = vmatpush.msra.mxu3 %v1677_v49 }
 0x777   : > { %v1224_v51 = vsel %vm820_vm5, %v1223_v50, -inf }
 0x778   : > { %v1257_v52 = vpop.f32.mrf.mxu2  ;;  %1225 = vmax.xlane.f32.xlu0 %v1224_v51  ;;  %v1675_v51 = vld [vmem:[%s2257_s14 + $0x48] sm:$0xff] }
 0x779   : > { %v1260_v53 = vmul.f32 0.25, %v1257_v52  ;;  %v1674_v52 = vld [vmem:[%s2257_s14 + $0x40] sm:$0xff] }
 0x77b   : > { %v1261_v54 = vadd.f32 %v1961_v31, %v1260_v53  ;;  %v1717_v53 = vld [vmem:[%s2256_s13 + $0x1] ss:$0 sm:$0xff] }
 0x77d   : > { %v1262_v20 = vsel %vm820_vm5, %v1261_v54, -inf }
 0x77e   : > { %1263 = vmax.xlane.f32.xlu2 %v1262_v20 }
 0x7eb   : > { %v1226_v21 = vpop.xlane.xlu0 %1225 }
 0x7ec   : > { %v1227_v55 = vsub.f32 %v1223_v50, %v1226_v21  ;;  %v1676_v50 = vld [vmem:[%s2257_s14 + $0x50] sm:$0xff] }
 0x7ed   : > { %1460 = vmatpush.msra.mxu3 %v1676_v50 }
 0x7ee   : > { %v1228_v56 = vmul.f32 1.442695, %v1227_v55 }
 0x7ef   : > { %1461 = vmatpush.msra.mxu3 %v1675_v51 }
 0x7f0   : > { %1737 = vpow2.f32 %v1228_v56 }
 0x7f1   : > { %v1264_v57 = vpop.xlane.xlu2 %1263  ;;  %1462 = vmatpush.msra.mxu3 %v1674_v52 }
 0x7f2   : > { %v1265_v58 = vsub.f32 %v1261_v54, %v1264_v57 }
 0x7f4   : > { %v1266_v59 = vmul.f32 1.442695, %v1265_v58 }
 0x7f6   : > { %v1738_v60 = vpop.eup %1737  ;;  %1739 = vpow2.f32 %v1266_v59 }
 0x7f7   : > { %v1230_v61 = vsel %vm820_vm5, %v1738_v60, 0.0 }
 0x7f8   : > { %1231 = vadd.xlane.f32.xlu2 %v1230_v61 }
 0x7fc   : > { %v1740_v62 = vpop.eup %1739 }
 0x7fd   : > { %v1268_v63 = vsel %vm820_vm5, %v1740_v62, 0.0 }
 0x7fe   : > { %1269 = vadd.xlane.f32.xlu1 %v1268_v63  ;;  %v1718_v63 = vld [vmem:[%s2258_s15 + $0x1] ss:$0 sm:$0xff] }
 0x86b   : > { %v1232_v31 = vpop.xlane.xlu2 %1231 }
 0x86c   : > { %1741 = vrcp.f32 %v1232_v31 }
 0x871   : > { %v1270_v0 = vpop.xlane.xlu1 %1269 }
 0x872   : > { %v1742_v1 = vpop.eup %1741  ;;  %1743 = vrcp.f32 %v1270_v0 }
 0x873   : > { %v1234_v2 = vmul.f32 %v1742_v1, %v1738_v60 }
 0x875   : > { %1659 = vmatmul.msk.f32.vlgmr.msrb.gmra.mxu0 %vm820_vm5, %v1234_v2 }
 0x878   : > { %v1744_v3 = vpop.eup %1743 }
 0x879   : > { %v1272_v4 = vmul.f32 %v1744_v3, %v1740_v62 }
 0x87b   : > { %1658 = vmatmul.msk.f32.vlgmr.msrb.gmra.mxu3 %vm820_vm5, %v1272_v4 }
 0x8f2   : > { %v1317_v9 = vpop.f32.mrf.mxu0 }
 0x8fe   : > { %v1294_v12 = vpop.f32.mrf.mxu3 }
 0x8ff   : > { %v1318_v13 = vadd.f32 %v1317_v9, %v1294_v12  ;;  %v1504_v9 = vld [vmem:[%s2261_s18 + $0x10] sm:$0xff]  ;;  %v1503_v12 = vld [vmem:[%s2261_s18 + $0x8] sm:$0xff] }
 0x900   : > { %1523 = vmatpush.msra.mxu0 %v1504_v9 }
 0x901   : > { %1665 = vmatmul.msk.f32.vlgmr.msra.gmra.mxu1 %vm703_vm0, %v1318_v13  ;;  %v1502_v13 = vld [vmem:[%s2261_s18] sm:$0xff] }
 0x902   : > { %1524 = vmatpush.msra.mxu0 %v1503_v12 }
 0x904   : > { %1525 = vmatpush.msra.mxu0 %v1502_v13 }
 0x97e   : > { %v1350_v15 = vpop.f32.mrf.mxu1 }
 0x97f   : > { %v1351_v11 = vadd.f32 %v1714_v14, %v1350_v15 }
 0x981   : > { %v1353_v16 = vadd.f32 %v1351_v11, %v2090_v34 }
 0x983   : > { %v1358_v17 = vsel %vm703_vm0, %v1353_v16, 0.0 }
 0x984   : > { %1359 = vadd.xlane.f32.xlu0 %v1358_v17 }
 0x9f7   : > { %v1360_v18 = vpop.xlane.xlu0 %1359 }
 0x9f8   : > { %v1361_v19 = vmul.f32 %v1360_v18, %v1989_v10 }
 0x9fa   : > { %v1362_v22 = vsub.f32 %v1353_v16, %v1361_v19 }
 0x9fc   : > { %v1363_v23 = vmul.f32 %v1362_v22, %v1362_v22 }
 0x9fe   : > { %v1364_v24 = vsel %vm703_vm0, %v1363_v23, 0.0 }
 0x9ff   : > { %1365 = vadd.xlane.f32.xlu1 %v1364_v24  ;;  %v1719_v24 = vld [vmem:[%s2259_s16 + $0x1] ss:$0 sm:$0xff] }
 0xa72   : > { %v1366_v29 = vpop.xlane.xlu1 %1365 }
 0xa73   : > { %v1367_v30 = vmul.f32 %v1366_v29, %v1989_v10  ;;  %v1534_v29 = vld [vmem:[%s2263_s20 + $0x18] sm:$0xff] }
 0xa74   : > { %1551 = vmatpush.msrb.mxu1 %v1534_v29 }
 0xa75   : > { %v1368_v32 = vadd.f32 1e-12, %v1367_v30  ;;  %v1533_v30 = vld [vmem:[%s2263_s20 + $0x10] sm:$0xff] }
 0xa76   : > { %1552 = vmatpush.msrb.mxu1 %v1533_v30 }
 0xa77   : > { %1745 = vrsqrt.f32 %v1368_v32  ;;  %vm1375_vm15 = vweird.f32 %v1368_v32 }
 0xa7d   : > { %v1746_v33 = vpop.eup %1745 }
 0xa7e   : > { %v1370_v34 = vmul.f32 %v1746_v33, %v1368_v32  ;;  %vm1376_vm14 = vweird.f32 %v1746_v33  ;;  %v1532_v32 = vld [vmem:[%s2263_s20 + $0x8] sm:$0xff] }
 0xa7f   : > { %vm1377_vm1 = vmor %vm1375_vm15, %vm1376_vm14  ;;  %1553 = vmatpush.msrb.mxu1 %v1532_v32 }
 0xa80   : > { %v1371_v35 = vmul.f32 %v1746_v33, %v1370_v34  ;;  %v1506_v34 = vld [vmem:[%s2262_s19] sm:$0x1] }
 0xa82   : > { %v1372_v36 = vmul.f32 0.5, %v1371_v35 }
 0xa84   : > { %v1373_v37 = vsub.f32 1.5, %v1372_v36 }
 0xa86   : > { %v1374_v38 = vmul.f32 %v1746_v33, %v1373_v37 }
 0xa88   : > { %v1378_v40 = vsel %vm1377_vm1, %v1746_v33, %v1374_v38  ;;  %v1531_v33 = vld [vmem:[%s2263_s20] sm:$0xff] }
 0xa89   : > { %v1379_v41 = vmul.f32 %v1378_v40, %v1362_v22  ;;  %1554 = vmatpush.msrb.mxu1 %v1531_v33  ;;  %v1535_v38 = vld [vmem:[%s2264_s21] sm:$0x1] }
 0xa8b   : > { %v1383_v43 = vmul.f32 %v1715_v39, %v1379_v41 }
 0xa8d   : > { %v1387_v44 = vadd.f32 %v1716_v42, %v1383_v43 }
 0xa8f   : > { %1673 = vmatmul.msk.f32.vlgmr.msrb.gmra.mxu2 %vm703_vm0, %v1387_v44 }
 0xb12   : > { %v1418_v54 = vpop.f32.mrf.mxu2 }
 0xb13   : > { %v1419_v20 = vadd.f32 %v1717_v53, %v1418_v54 }
 0xb15   : > { %v1421_v21 = vmul.f32 %v1419_v20, %v1419_v20 }
 0xb17   : > { %v1422_v55 = vmul.f32 %v1421_v21, %v1419_v20 }
 0xb19   : > { %v1423_v56 = vmul.f32 0.044715, %v1422_v55 }
 0xb1b   : > { %v1424_v57 = vadd.f32 %v1423_v56, %v1419_v20 }
 0xb1d   : > { %v1425_v58 = vmul.f32 0.7978846, %v1424_v57 }
 0xb1f   : > { %1747 = vtanh.f32 %v1425_v58 }
 0xb25   : > { %v1748_v59 = vpop.eup %1747 }
 0xb26   : > { %v1427_v60 = vadd.f32 1.0, %v1748_v59 }
 0xb28   : > { %v1428_v61 = vmul.f32 0.5, %v1427_v60 }
 0xb2a   : > { %v1429_v62 = vmul.f32 %v1428_v61, %v1419_v20 }
 0xb2c   : > { %1683 = vmatmul.msk.f32.vlgmr.msra.gmra.mxu3 %vm1045_vm10, %v1429_v62 }
 0xbaf   : > { %v1464_v31 = vpop.f32.mrf.mxu3 }
 0xbb0   : > { %v1465_v0 = vadd.f32 %v1718_v63, %v1464_v31 }
 0xbb2   : > { %v1467_v1 = vadd.f32 %v1465_v0, %v1387_v44 }
 0xbb4   : > { %v1472_v2 = vsel %vm703_vm0, %v1467_v1, 0.0 }
 0xbb5   : > { %1473 = vadd.xlane.f32.xlu2 %v1472_v2 }
 0xc28   : > { %v1474_v3 = vpop.xlane.xlu2 %1473 }
 0xc29   : > { %v1475_v4 = vmul.f32 %v1474_v3, %v1989_v10 }
 0xc2b   : > { %v1476_v5 = vsub.f32 %v1467_v1, %v1475_v4 }
 0xc2d   : > { %v1477_v6 = vmul.f32 %v1476_v5, %v1476_v5 }
 0xc2f   : > { %v1478_v7 = vsel %vm703_vm0, %v1477_v6, 0.0 }
 0xc30   : > { %1479 = vadd.xlane.f32.xlu0 %v1478_v7 }
 0xca3   : > { %v1480_v14 = vpop.xlane.xlu0 %1479 }
 0xca4   : > { %v1481_v15 = vmul.f32 %v1480_v14, %v1989_v10  ;;  %v1720_v10 = vld [vmem:[%s2260_s17 + $0x1] ss:$0 sm:$0xff] }
 0xca6   : > { %v1482_v11 = vadd.f32 1e-12, %v1481_v15 }
 0xca8   : > { %1749 = vrsqrt.f32 %v1482_v11  ;;  %vm1489_vm3 = vweird.f32 %v1482_v11 }
 0xcae   : > { %v1750_v16 = vpop.eup %1749 }
 0xcaf   : > { %v1484_v17 = vmul.f32 %v1750_v16, %v1482_v11  ;;  %vm1490_vm2 = vweird.f32 %v1750_v16 }
 0xcb0   : > { %vm1491_vm4 = vmor %vm1489_vm3, %vm1490_vm2 }
 0xcb1   : > { %v1485_v18 = vmul.f32 %v1750_v16, %v1484_v17 }
 0xcb3   : > { %v1486_v19 = vmul.f32 0.5, %v1485_v18 }
 0xcb5   : > { %v1487_v22 = vsub.f32 1.5, %v1486_v19 }
 0xcb7   : > { %v1488_v23 = vmul.f32 %v1750_v16, %v1487_v22 }
 0xcb9   : > { %v1492_v25 = vsel %vm1491_vm4, %v1750_v16, %v1488_v23 }
 0xcba   : > { %v1493_v26 = vmul.f32 %v1492_v25, %v1476_v5 }
 0xcbc   : > { %v1497_v27 = vmul.f32 %v1719_v24, %v1493_v26 }
 0xcbe   : > { %v1501_v28 = vadd.f32 %v1720_v10, %v1497_v27 }
 0xcc0   : > { %1686 = vmatmul.msk.f32.vlgmr.msra.gmra.mxu0 %vm703_vm0, %v1501_v28 }
 0xd3d   : > { %v1527_v35 = vpop.f32.mrf.mxu0 }
 0xd3e   : > { %v1528_v36 = vadd.f32 %v1527_v35, %v1506_v34 }
 0xd40   : > { %1751 = vtanh.f32 %v1528_v36 }
 0xd46   : > { %v1752_v37 = vpop.eup %1751 }
 0xd47   : > { %1687 = vmatmul.msk.f32.vlgmr.msrb.gmra.mxu1 %vm703_vm0, %v1752_v37 }
 0xdc4   : > { %v1556_v39 = vpop.f32.mrf.mxu1 }
 0xdc5   : > { %v1557_v40 = vadd.f32 %v1556_v39, %v1535_v38 }
 0xdc7   : > { %1559 = vst [vmem:[%s690_s25] sm:$0x1] %v1557_v40 }
 0xdc8 PF: > { %s2289_s3 = sld [smem:[#allocation2_spill]] }
 0xdce   : > { %s32_s3 = sadd.s32 1, %s2289_s3  }
 0xdcf   : > { %p29_p4 = scmp.ge.s32.totalorder %s32_s3, 4  }
 0xdd1   :  { %31 = sbr.rel (!%p29_p4) target bundleno = 9 (0x9), region = 157 }

</bundles_post_ra>
